<compile_context>
chip_gen: v5e
topology: v5e:2x2
jax: 0.10.0
libtpu: 0.0.40
codegen_flags: <defaults>
</compile_context>

<pallas_src>
import functools

import jax
import jax.numpy as jnp
from jax.experimental import pallas as pl
from jax.experimental.pallas import tpu as pltpu


def _mtnam_kernel(x_ref, w0sel_ref, b0w0_ref, *refs, num_hidden):
    """refs = ([w_bd_l, bw_l] * num_hidden, w_contrib, w_sum, bias,
               contrib_out, summed_out)."""
    w_contrib_ref = refs[2 * num_hidden]
    w_sum_ref = refs[2 * num_hidden + 1]
    bias_ref = refs[2 * num_hidden + 2]
    contrib_ref = refs[2 * num_hidden + 3]
    summed_ref = refs[2 * num_hidden + 4]

    # First LinReLU (in_features = 1), all F*S subnets at once:
    #   relu((x_f - b0) @ w0) == relu(x_f*w0 - b0*w0)  -> one wide matmul.
    h = jnp.maximum(
        jnp.dot(x_ref[...], w0sel_ref[...],
                preferred_element_type=jnp.float32) - b0w0_ref[...],
        0.0)                                                   # (bb, FS*U)

    # Hidden LinReLU layers as block-diagonal lane-dense matmuls with the bias
    # pre-folded into a single (1, FS*out_l) row.
    for l in range(num_hidden):
        w_bd = refs[2 * l][...]                                # (FS*in, FS*out)
        bw = refs[2 * l + 1][...]                              # (1, FS*out)
        h = jnp.maximum(
            jnp.dot(h, w_bd, preferred_element_type=jnp.float32) - bw, 0.0)

    # Per-subnet output Linear + subnet->task Linear folded into one matrix:
    # one matmul, one unmasked full-tile store (t-major lane order -> the
    # wrapper's (B, T, F) reshape is free).
    contrib_ref[...] = jnp.dot(h, w_contrib_ref[...],
                               preferred_element_type=jnp.float32)
    # summed_out via a second tiny matmul (W_sum == W_contrib summed over f).
    summed_ref[...] = (jnp.dot(h, w_sum_ref[...],
                               preferred_element_type=jnp.float32)
                       + bias_ref[...])


def multitask_nam_forward(x, w0, b0, hidden_ws, hidden_bs, w_out, w_task, bias,
                          *, batch_block=None):
    """x: (B, F) float32.

    w0          : (F, S, 1, U)        first LinReLU weights (in_features = 1)
    b0          : (F, S, 1)           first LinReLU biases
    hidden_ws[l]: (F, S, in_l, out_l) hidden LinReLU weights
    hidden_bs[l]: (F, S, in_l)        hidden LinReLU biases
    w_out       : (F, S, H_last, 1)   per-subnet output Linear (no bias)
    w_task      : (F, S, T)           per-feature subnet->task Linear (no bias)
    bias        : (1, T)              MultiTaskNAM._bias

    Returns (summed_out, dropout_out) with shapes (B, T) and (B, T, F),
    matching the PyTorch module in eval mode.
    """
    B, F = x.shape
    _, S, _, U = w0.shape
    T = w_task.shape[-1]
    H = w_out.shape[2]
    FS = F * S
    num_hidden = len(hidden_ws)

    x = x.astype(jnp.float32)
    f32 = jnp.float32

    # ---- Host-side weight fusion (pure reshapes / einsums, traced by XLA). --
    eye_f = jnp.eye(F, dtype=f32)
    eye_fs = jnp.eye(FS, dtype=f32)

    # First layer: W0sel[f, (f*S+s)*U + u] = w0[f, s, 0, u], zero elsewhere.
    w0_flat = w0.astype(f32).reshape(F, S * U)
    w0sel = (eye_f[:, :, None] * w0_flat[:, None, :]).reshape(F, FS * U)
    # Pre-folded first-layer bias row: b0w0[(f*S+s)*U + u] = b0[f,s]*w0[f,s,u].
    b0w0 = (b0.astype(f32).reshape(F, S, 1)
            * w0.astype(f32).reshape(F, S, U)).reshape(1, FS * U)

    # Hidden layers: block-diagonal weights + pre-folded bias rows.
    hidden_bd, hidden_bw = [], []
    for w, b in zip(hidden_ws, hidden_bs):
        din, dout = w.shape[2], w.shape[3]
        wfs = w.astype(f32).reshape(FS, din, dout)
        bfs = b.astype(f32).reshape(FS, din)
        w_bd = (eye_fs[:, None, :, None]
                * wfs[:, :, None, :]).reshape(FS * din, FS * dout)
        bw = jnp.einsum('ni,nio->no', bfs, wfs).reshape(1, FS * dout)
        hidden_bd.append(w_bd)
        hidden_bw.append(bw)

    # w_out (*) w_task folded into the contribution / sum matrices.
    wo = w_out.astype(f32).reshape(F, S, H)
    wc = jnp.einsum('fsk,fst->fskt', wo, w_task.astype(f32))    # (F,S,H,T)
    w_sum = wc.reshape(FS * H, T)
    w_contrib = (wc[..., None]
                 * eye_f[:, None, None, None, :]).reshape(FS * H, T * F)
    bias_r = bias.astype(f32).reshape(1, T)

    # ---- Grid / block selection. -------------------------------------------
    if batch_block is None:
        for cand in (512, 256, 128):
            if B >= cand and B % cand == 0:
                batch_block = cand
                break
        else:
            batch_block = B
    assert B % batch_block == 0, "pad the batch or pass a divisor batch_block"
    grid = (B // batch_block,)
    # TODO(synk): on v7x ensure >= 2 batch blocks so both TensorCores are busy.

    weight_ops = [w0sel, b0w0]
    for w_bd, bw in zip(hidden_bd, hidden_bw):
        weight_ops.append(w_bd)
        weight_ops.append(bw)
    weight_ops += [w_contrib, w_sum, bias_r]

    in_specs = [pl.BlockSpec((batch_block, F), lambda g: (g, 0))]
    in_specs += [pl.BlockSpec(arr.shape, lambda g: (0, 0)) for arr in weight_ops]

    out_shapes = (jax.ShapeDtypeStruct((B, T * F), f32),
                  jax.ShapeDtypeStruct((B, T), f32))
    out_specs = [pl.BlockSpec((batch_block, T * F), lambda g: (g, 0)),
                 pl.BlockSpec((batch_block, T), lambda g: (g, 0))]

    contrib_flat, summed_out = pl.pallas_call(
        functools.partial(_mtnam_kernel, num_hidden=num_hidden),
        out_shape=out_shapes,
        grid_spec=pltpu.PrefetchScalarGridSpec(
            num_scalar_prefetch=0,
            grid=grid,
            in_specs=in_specs,
            out_specs=out_specs),
        compiler_params=pltpu.CompilerParams(
            dimension_semantics=("parallel",)),
    )(x, *weight_ops)

    # (B, T*F) -> (B, T, F) is a free row-major reshape (no transpose).
    dropout_out = contrib_flat.reshape(B, T, F)
    return summed_out, dropout_out


def init_params(key, num_inputs, num_subnets, num_tasks, num_units,
                hidden_sizes):
    """Deterministic synthetic parameters stacked over (feature, subnet).

    num_units is a single int (uniform over features) so subnet params stack
    into dense arrays.
    TODO(synk): heterogeneous per-feature num_units (a list) would need ragged
    padding to stack.
    """
    F, S, T, U = num_inputs, num_subnets, num_tasks, num_units
    sizes = [U] + list(hidden_sizes)
    n_hidden = len(sizes) - 1
    keys = jax.random.split(key, 2 + 2 * n_hidden + 3)
    k = iter(keys)

    w0 = 0.5 * jax.random.normal(next(k), (F, S, 1, U), dtype=jnp.float32)
    b0 = 0.5 * jax.random.normal(next(k), (F, S, 1), dtype=jnp.float32)
    hidden_ws, hidden_bs = [], []
    for i in range(n_hidden):
        fan_in, fan_out = sizes[i], sizes[i + 1]
        hidden_ws.append(
            jax.random.normal(next(k), (F, S, fan_in, fan_out),
                              dtype=jnp.float32) / jnp.sqrt(float(fan_in)))
        hidden_bs.append(
            0.5 * jax.random.normal(next(k), (F, S, fan_in), dtype=jnp.float32))
    h_last = sizes[-1]
    w_out = (jax.random.normal(next(k), (F, S, h_last, 1), dtype=jnp.float32)
             / jnp.sqrt(float(h_last)))
    w_task = (jax.random.normal(next(k), (F, S, T), dtype=jnp.float32)
              / jnp.sqrt(float(S)))
    bias = 0.1 * jax.random.normal(next(k), (1, T), dtype=jnp.float32)
    return w0, b0, hidden_ws, hidden_bs, w_out, w_task, bias


def multitask_nam_reference(x, w0, b0, hidden_ws, hidden_bs, w_out, w_task,
                            bias):
    """Pure-JAX reference mirroring the PyTorch forward (eval mode)."""
    B, F = x.shape
    S = w0.shape[1]
    feat_outs = []
    for f in range(F):
        sub_outs = []
        for s in range(S):
            h = x[:, f:f + 1]                                    # (B, 1)
            h = jnp.maximum((h - b0[f, s]) @ w0[f, s], 0.0)      # (B, U)
            for wl, bl in zip(hidden_ws, hidden_bs):
                h = jnp.maximum((h - bl[f, s]) @ wl[f, s], 0.0)
            sub_outs.append(h @ w_out[f, s])                     # (B, 1)
        stacked = jnp.concatenate(sub_outs, axis=-1)             # (B, S)
        feat_outs.append(stacked @ w_task[f])                    # (B, T)
    dropout_out = jnp.stack(feat_outs, axis=-1)                  # (B, T, F)
    summed_out = jnp.sum(dropout_out, axis=2) + bias             # (B, T)
    return summed_out, dropout_out


if __name__ == "__main__":
    # Small config consistent with the module: num_inputs=4 features,
    # num_units=[32]*4 (uniform), num_subnets=3, num_tasks=3,
    # hidden_sizes=[64, 32], batch=16.
    # TODO(synk): dropout / feature_dropout are train-time RNG ops; this kernel
    # implements eval mode (identity), matching module.eval().
    B, F, S, T, U = 16, 4, 3, 3, 32
    hidden_sizes = [64, 32]

    key = jax.random.PRNGKey(0)
    kx, kp = jax.random.split(key)
    x = jax.random.normal(kx, (B, F), dtype=jnp.float32)
    params = init_params(kp, F, S, T, U, hidden_sizes)

    summed_out, dropout_out = multitask_nam_forward(x, *params)
    jax.block_until_ready((summed_out, dropout_out))

    ref_summed, ref_dropout = multitask_nam_reference(x, *params)
    assert summed_out.shape == (B, T) and dropout_out.shape == (B, T, F)
    assert jnp.allclose(dropout_out, ref_dropout, atol=2e-4, rtol=2e-4)
    assert jnp.allclose(summed_out, ref_summed, atol=2e-4, rtol=2e-4)

    print("KERNEL_OK")
</pallas_src>

<mosaic_0001>
module attributes {stable_mosaic.version = 11 : i64} {
  func.func @_mtnam_kernel(%arg0: i32, %arg1: memref<16x4xf32, #tpu.memory_space<vmem>>, %arg2: memref<4x384xf32, #tpu.memory_space<vmem>>, %arg3: memref<1x384xf32, #tpu.memory_space<vmem>>, %arg4: memref<384x768xf32, #tpu.memory_space<vmem>>, %arg5: memref<1x768xf32, #tpu.memory_space<vmem>>, %arg6: memref<768x384xf32, #tpu.memory_space<vmem>>, %arg7: memref<1x384xf32, #tpu.memory_space<vmem>>, %arg8: memref<384x12xf32, #tpu.memory_space<vmem>>, %arg9: memref<384x3xf32, #tpu.memory_space<vmem>>, %arg10: memref<1x3xf32, #tpu.memory_space<vmem>>, %arg11: memref<16x12xf32, #tpu.memory_space<vmem>>, %arg12: memref<16x3xf32, #tpu.memory_space<vmem>>) attributes {dimension_semantics = [#tpu.dimension_semantics<parallel>], iteration_bounds = array<i64: 1>, scalar_prefetch = 0 : i64, scratch_operands = 0 : i64, tpu.core_type = #tpu.core_type<tc>, window_params = [{transform_indices = @transform_0, window_bounds = array<i64: 16, 4>}, {pipeline_mode = #tpu.pipeline_mode<synchronous>, transform_indices = @transform_1, window_bounds = array<i64: 4, 384>}, {pipeline_mode = #tpu.pipeline_mode<synchronous>, transform_indices = @transform_2, window_bounds = array<i64: 1, 384>}, {pipeline_mode = #tpu.pipeline_mode<synchronous>, transform_indices = @transform_3, window_bounds = array<i64: 384, 768>}, {pipeline_mode = #tpu.pipeline_mode<synchronous>, transform_indices = @transform_4, window_bounds = array<i64: 1, 768>}, {pipeline_mode = #tpu.pipeline_mode<synchronous>, transform_indices = @transform_5, window_bounds = array<i64: 768, 384>}, {pipeline_mode = #tpu.pipeline_mode<synchronous>, transform_indices = @transform_6, window_bounds = array<i64: 1, 384>}, {pipeline_mode = #tpu.pipeline_mode<synchronous>, transform_indices = @transform_7, window_bounds = array<i64: 384, 12>}, {pipeline_mode = #tpu.pipeline_mode<synchronous>, transform_indices = @transform_8, window_bounds = array<i64: 384, 3>}, {pipeline_mode = #tpu.pipeline_mode<synchronous>, transform_indices = @transform_9, window_bounds = array<i64: 1, 3>}, {transform_indices = @transform_10, window_bounds = array<i64: 16, 12>}, {transform_indices = @transform_11, window_bounds = array<i64: 16, 3>}]} {
    %c0 = arith.constant 0 : index
    %c0_0 = arith.constant 0 : index
    %0 = vector.load %arg1[%c0, %c0_0] : memref<16x4xf32, #tpu.memory_space<vmem>>, vector<16x4xf32>
    %c0_1 = arith.constant 0 : index
    %c0_2 = arith.constant 0 : index
    %1 = vector.load %arg2[%c0_1, %c0_2] : memref<4x384xf32, #tpu.memory_space<vmem>>, vector<4x384xf32>
    %cst = arith.constant dense<0.000000e+00> : vector<16x384xf32>
    %2 = tpu.matmul %0, %1, %cst {dimension_numbers = #tpu.dot_dimension_numbers<[1], [0], [0], [1], [0, 0, 1, 1], [], []>} : vector<16x4xf32>, vector<4x384xf32>, vector<16x384xf32> -> vector<16x384xf32>
    %c0_3 = arith.constant 0 : index
    %c0_4 = arith.constant 0 : index
    %3 = vector.load %arg3[%c0_3, %c0_4] : memref<1x384xf32, #tpu.memory_space<vmem>>, vector<1x384xf32>
    %4 = vector.broadcast %3 : vector<1x384xf32> to vector<16x384xf32>
    %5 = arith.subf %2, %4 : vector<16x384xf32>
    %cst_5 = arith.constant 0.000000e+00 : f32
    %6 = vector.broadcast %cst_5 : f32 to vector<16x384xf32>
    %7 = arith.maximumf %5, %6 : vector<16x384xf32>
    %c0_6 = arith.constant 0 : index
    %c0_7 = arith.constant 0 : index
    %8 = vector.load %arg4[%c0_6, %c0_7] : memref<384x768xf32, #tpu.memory_space<vmem>>, vector<384x768xf32>
    %c0_8 = arith.constant 0 : index
    %c0_9 = arith.constant 0 : index
    %9 = vector.load %arg5[%c0_8, %c0_9] : memref<1x768xf32, #tpu.memory_space<vmem>>, vector<1x768xf32>
    %cst_10 = arith.constant dense<0.000000e+00> : vector<16x768xf32>
    %10 = tpu.matmul %7, %8, %cst_10 {dimension_numbers = #tpu.dot_dimension_numbers<[1], [0], [0], [1], [0, 0, 1, 1], [], []>} : vector<16x384xf32>, vector<384x768xf32>, vector<16x768xf32> -> vector<16x768xf32>
    %11 = vector.broadcast %9 : vector<1x768xf32> to vector<16x768xf32>
    %12 = arith.subf %10, %11 : vector<16x768xf32>
    %cst_11 = arith.constant 0.000000e+00 : f32
    %13 = vector.broadcast %cst_11 : f32 to vector<16x768xf32>
    %14 = arith.maximumf %12, %13 : vector<16x768xf32>
    %c0_12 = arith.constant 0 : index
    %c0_13 = arith.constant 0 : index
    %15 = vector.load %arg6[%c0_12, %c0_13] : memref<768x384xf32, #tpu.memory_space<vmem>>, vector<768x384xf32>
    %c0_14 = arith.constant 0 : index
    %c0_15 = arith.constant 0 : index
    %16 = vector.load %arg7[%c0_14, %c0_15] : memref<1x384xf32, #tpu.memory_space<vmem>>, vector<1x384xf32>
    %cst_16 = arith.constant dense<0.000000e+00> : vector<16x384xf32>
    %17 = tpu.matmul %14, %15, %cst_16 {dimension_numbers = #tpu.dot_dimension_numbers<[1], [0], [0], [1], [0, 0, 1, 1], [], []>} : vector<16x768xf32>, vector<768x384xf32>, vector<16x384xf32> -> vector<16x384xf32>
    %18 = vector.broadcast %16 : vector<1x384xf32> to vector<16x384xf32>
    %19 = arith.subf %17, %18 : vector<16x384xf32>
    %cst_17 = arith.constant 0.000000e+00 : f32
    %20 = vector.broadcast %cst_17 : f32 to vector<16x384xf32>
    %21 = arith.maximumf %19, %20 : vector<16x384xf32>
    %c0_18 = arith.constant 0 : index
    %c0_19 = arith.constant 0 : index
    %22 = vector.load %arg8[%c0_18, %c0_19] : memref<384x12xf32, #tpu.memory_space<vmem>>, vector<384x12xf32>
    %cst_20 = arith.constant dense<0.000000e+00> : vector<16x12xf32>
    %23 = tpu.matmul %21, %22, %cst_20 {dimension_numbers = #tpu.dot_dimension_numbers<[1], [0], [0], [1], [0, 0, 1, 1], [], []>} : vector<16x384xf32>, vector<384x12xf32>, vector<16x12xf32> -> vector<16x12xf32>
    %c0_21 = arith.constant 0 : index
    %c0_22 = arith.constant 0 : index
    %24 = vector.load %arg11[%c0_21, %c0_22] : memref<16x12xf32, #tpu.memory_space<vmem>>, vector<16x12xf32>
    tpu.vector_store %arg11[%c0_21, %c0_22], %23 {strides = array<i32>} : memref<16x12xf32, #tpu.memory_space<vmem>>, vector<16x12xf32>,
    %c0_23 = arith.constant 0 : index
    %c0_24 = arith.constant 0 : index
    %25 = vector.load %arg9[%c0_23, %c0_24] : memref<384x3xf32, #tpu.memory_space<vmem>>, vector<384x3xf32>
    %cst_25 = arith.constant dense<0.000000e+00> : vector<16x3xf32>
    %26 = tpu.matmul %21, %25, %cst_25 {dimension_numbers = #tpu.dot_dimension_numbers<[1], [0], [0], [1], [0, 0, 1, 1], [], []>} : vector<16x384xf32>, vector<384x3xf32>, vector<16x3xf32> -> vector<16x3xf32>
    %c0_26 = arith.constant 0 : index
    %c0_27 = arith.constant 0 : index
    %27 = vector.load %arg10[%c0_26, %c0_27] : memref<1x3xf32, #tpu.memory_space<vmem>>, vector<1x3xf32>
    %28 = vector.broadcast %27 : vector<1x3xf32> to vector<16x3xf32>
    %29 = arith.addf %26, %28 : vector<16x3xf32>
    %c0_28 = arith.constant 0 : index
    %c0_29 = arith.constant 0 : index
    %30 = vector.load %arg12[%c0_28, %c0_29] : memref<16x3xf32, #tpu.memory_space<vmem>>, vector<16x3xf32>
    tpu.vector_store %arg12[%c0_28, %c0_29], %29 {strides = array<i32>} : memref<16x3xf32, #tpu.memory_space<vmem>>, vector<16x3xf32>,
    return
  }
  func.func @transform_0(%arg0: i32) -> (i32, i32) {
    %c0_i32 = arith.constant 0 : i32
    %c0_i32_0 = arith.constant 0 : i32
    return %arg0, %c0_i32 : i32, i32
  }
  func.func @transform_1(%arg0: i32) -> (i32, i32) {
    %c0_i32 = arith.constant 0 : i32
    %c0_i32_0 = arith.constant 0 : i32
    %c0_i32_1 = arith.constant 0 : i32
    return %c0_i32, %c0_i32_0 : i32, i32
  }
  func.func @transform_2(%arg0: i32) -> (i32, i32) {
    %c0_i32 = arith.constant 0 : i32
    %c0_i32_0 = arith.constant 0 : i32
    %c0_i32_1 = arith.constant 0 : i32
    return %c0_i32, %c0_i32_0 : i32, i32
  }
  func.func @transform_3(%arg0: i32) -> (i32, i32) {
    %c0_i32 = arith.constant 0 : i32
    %c0_i32_0 = arith.constant 0 : i32
    %c0_i32_1 = arith.constant 0 : i32
    return %c0_i32, %c0_i32_0 : i32, i32
  }
  func.func @transform_4(%arg0: i32) -> (i32, i32) {
    %c0_i32 = arith.constant 0 : i32
    %c0_i32_0 = arith.constant 0 : i32
    %c0_i32_1 = arith.constant 0 : i32
    return %c0_i32, %c0_i32_0 : i32, i32
  }
  func.func @transform_5(%arg0: i32) -> (i32, i32) {
    %c0_i32 = arith.constant 0 : i32
    %c0_i32_0 = arith.constant 0 : i32
    %c0_i32_1 = arith.constant 0 : i32
    return %c0_i32, %c0_i32_0 : i32, i32
  }
  func.func @transform_6(%arg0: i32) -> (i32, i32) {
    %c0_i32 = arith.constant 0 : i32
    %c0_i32_0 = arith.constant 0 : i32
    %c0_i32_1 = arith.constant 0 : i32
    return %c0_i32, %c0_i32_0 : i32, i32
  }
  func.func @transform_7(%arg0: i32) -> (i32, i32) {
    %c0_i32 = arith.constant 0 : i32
    %c0_i32_0 = arith.constant 0 : i32
    %c0_i32_1 = arith.constant 0 : i32
    return %c0_i32, %c0_i32_0 : i32, i32
  }
  func.func @transform_8(%arg0: i32) -> (i32, i32) {
    %c0_i32 = arith.constant 0 : i32
    %c0_i32_0 = arith.constant 0 : i32
    %c0_i32_1 = arith.constant 0 : i32
    return %c0_i32, %c0_i32_0 : i32, i32
  }
  func.func @transform_9(%arg0: i32) -> (i32, i32) {
    %c0_i32 = arith.constant 0 : i32
    %c0_i32_0 = arith.constant 0 : i32
    %c0_i32_1 = arith.constant 0 : i32
    return %c0_i32, %c0_i32_0 : i32, i32
  }
  func.func @transform_10(%arg0: i32) -> (i32, i32) {
    %c0_i32 = arith.constant 0 : i32
    %c0_i32_0 = arith.constant 0 : i32
    return %arg0, %c0_i32 : i32, i32
  }
  func.func @transform_11(%arg0: i32) -> (i32, i32) {
    %c0_i32 = arith.constant 0 : i32
    %c0_i32_0 = arith.constant 0 : i32
    return %arg0, %c0_i32 : i32, i32
  }
}

</mosaic_0001>

<bundles_post_ra>
// kernel: tpu_custom_call.1
= control target key start
LH: loop header
LB: loop body
LE: loop exit
PB: predicated region body
PF: predicated region fallthrough
CT: control target
= control target key end

     0   :  { %17 = vsyncpa [#allocation3], 0  ;;  %s2784_s0 = inlined_call_operand.vmem [shape: f32[16,4], index: 0, kind: input, shape index: {}]   ;;  %s2785_s1 = inlined_call_operand.hbm [shape: f32[4,384], index: 1, kind: input, shape index: {}]   ;;  %s2786_s2 = inlined_call_operand.hbm [shape: f32[1,384], index: 2, kind: input, shape index: {}]   ;;  %s2787_s3 = inlined_call_operand.hbm [shape: f32[384,768], index: 3, kind: input, shape index: {}]   ;;  %s2788_s4 = inlined_call_operand.hbm [shape: f32[1,768], index: 4, kind: input, shape index: {}]   ;;  %s2789_s5 = inlined_call_operand.hbm [shape: f32[768,384], index: 5, kind: input, shape index: {}]   ;;  %s2790_s6 = inlined_call_operand.hbm [shape: f32[1,384], index: 6, kind: input, shape index: {}]   ;;  %s2791_s7 = inlined_call_operand.vmem [shape: f32[384,12], index: 7, kind: input, shape index: {}]   ;;  %s2792_s8 = inlined_call_operand.vmem [shape: f32[384,3], index: 8, kind: input, shape index: {}]   ;;  %s2793_s9 = inlined_call_operand.hbm [shape: f32[1,3], index: 9, kind: input, shape index: {}]   ;;  %s2794_s10 = inlined_call_operand.hbm [shape: f32[16,12], index: 10, kind: output, shape index: {0}]   ;;  %s2795_s11 = inlined_call_operand.vmem [shape: f32[16,3], index: 11, kind: output, shape index: {1}]  }
   0x1   :  { %18 = vsyncpa [#allocation6], 0 }
   0x2   :  { %19 = vsyncpa [#allocation9], 0 }
   0x3   :  { %20 = vsyncpa [#allocation12], 0  ;;  %s40_s19 = sshll.u32 %s2786_s2, 4  ;;  %s41_s19 = int_to_ptr.hbm [resolvable:$true] %s40_s19 }
   0x4   :  { %21 = vsyncpa [#allocation4], 0  ;;  %s2242_s20 = smov [#allocation5]   ;;  %s64_s24 = sshll.u32 %s2788_s4, 4  ;;  %s65_s24 = int_to_ptr.hbm [resolvable:$true] %s64_s24 }
   0x5   :  { %s42_s21 = sshll.u32 %s2242_s20, 4  ;;  %s2243_s25 = smov [#allocation8]   ;;  %s43_s21 = int_to_ptr.vmem [resolvable:$true] %s42_s21 }
   0x6   :  { %45 = dma.hbm_to_vmem [thread:$0]  %s41_s19, 48, %s43_s21, [#allocation6]  }
   0x7   :  { %s66_s26 = sshll.u32 %s2243_s25, 4  ;;  %s88_s29 = sshll.u32 %s2790_s6, 4  ;;  %s67_s26 = int_to_ptr.vmem [resolvable:$true] %s66_s26  ;;  %s89_s29 = int_to_ptr.hbm [resolvable:$true] %s88_s29 }
   0x8   :  { %69 = dma.hbm_to_vmem [thread:$0]  %s65_s24, 96, %s67_s26, [#allocation9]  }
   0x9   :  { %s29_s12 = sshll.u32 %s2785_s1, 4  ;;  %s2244_s13 = smov [#allocation11]   ;;  %s30_s12 = int_to_ptr.hbm [resolvable:$true] %s29_s12 }
   0xa   :  { %s90_s14 = sshll.u32 %s2244_s13, 4  ;;  %s2245_s4 = smov [#allocation2]   ;;  %s91_s14 = int_to_ptr.vmem [resolvable:$true] %s90_s14 }
   0xb   :  { %93 = dma.hbm_to_vmem [thread:$0]  %s89_s29, 48, %s91_s14, [#allocation12]  }
   0xc   :  { %s31_s15 = sshll.u32 %s2245_s4, 4  ;;  %s50_s18 = sshll.u32 %s2787_s3, 4  ;;  %s32_s15 = int_to_ptr.vmem [resolvable:$true] %s31_s15  ;;  %s51_s18 = int_to_ptr.hbm [resolvable:$true] %s50_s18 }
   0xd   :  { %34 = dma.hbm_to_vmem [thread:$0]  %s30_s12, 192, %s32_s15, [#allocation3]  }
   0xe   :  { %s2246_s6 = smov [#allocation7]   ;;  %s74_s1 = sshll.u32 %s2789_s5, 4  ;;  %s75_s1 = int_to_ptr.hbm [resolvable:$true] %s74_s1 }
   0xf   :  { %s52_s19 = sshll.u32 %s2246_s6, 4  ;;  %s2247_s22 = smov 768   ;;  %s53_s19 = int_to_ptr.vmem [resolvable:$true] %s52_s19 }
  0x10   :  { %s2248_s23 = smov 48   ;;  %s2249_s24 = smov [#allocation10]  }
  0x11   :  { %58 = dma.hbm_to_vmem [thread:$0]  %s51_s18, 36864, %s53_s19, [#allocation6], %s2247_s22, %s2247_s22, %s2248_s23  }
  0x12   :  { %s76_s25 = sshll.u32 %s2249_s24, 4  ;;  %s2250_s26 = smov 384   ;;  %s77_s25 = int_to_ptr.vmem [resolvable:$true] %s76_s25 }
  0x13   :  { %s2251_s27 = smov 24   ;;  %s103_s29 = sshll.u32 %s2793_s9, 4  ;;  %s104_s29 = int_to_ptr.hbm [resolvable:$true] %s103_s29 }
  0x14   :  { %82 = dma.hbm_to_vmem [thread:$0]  %s75_s1, 36864, %s77_s25, [#allocation9], %s2250_s26, %s2250_s26, %s2251_s27  }
  0x15   :  { %s2252_s2 = smov [#allocation13]  }
  0x16   :  { %s105_s30 = sshll.u32 %s2252_s2, 4  ;;  %s106_s30 = int_to_ptr.vmem [resolvable:$true] %s105_s30 }
  0x17   :  { %108 = dma.hbm_to_vmem [thread:$0]  %s104_s29, 16, %s106_s30, [#allocation12]  }
  0x18   :  { %2232 = dma.done.wait [#allocation3], 192  }
  0x19   :  { %2233 = vsyncadd [#allocation3], 4294967104 }
  0x1a   :  { %2234 = dma.done.wait [#allocation6], 36912  }
  0x1b   :  { %2235 = vsyncadd [#allocation6], 4294930384 }
  0x1c   :  { %2236 = dma.done.wait [#allocation9], 36960  }
  0x1d   :  { %2237 = vsyncadd [#allocation9], 4294930336 }
  0x1e   :  { %2238 = dma.done.wait [#allocation12], 64  }
  0x1f   :  { %2239 = vsyncadd [#allocation12], 4294967232  ;;  %v139_v0 = vld [vmem:[#allocation2] sm:$0xff]  ;;  %v140_v1 = vld [vmem:[#allocation2 + $0x8] sm:$0xf]  ;;  %vm156_vm0 = vcmask 1043456  }
  0x20   :  { %143 = vst [vmem:[#allocation1] ss:$2 sm:$0xff] %v139_v0  ;;  %v342_v2 = vld [vmem:[#allocation7 + $0x2d0] sm:$0xff]  ;;  %v336_v3 = vld [vmem:[#allocation7 + $0x2a0] sm:$0xff]  ;;  %v137_v6 = vld [vmem:[%s2784_s0] sm:$0xff]  ;;  %vm149_vm1 = vcmask 31744  }
  0x21   :  { %145 = vst [vmem:[#allocation1 + $0x10] ss:$2 sm:$0xff] %v140_v1  ;;  %541 = vmatpush.msra.mxu3 %v342_v2  ;;  %v330_v4 = vld [vmem:[#allocation7 + $0x270] sm:$0xff]  ;;  %v324_v5 = vld [vmem:[#allocation7 + $0x240] sm:$0xff]  ;;  %v343_v11 = vld [vmem:[#allocation7 + $0x2d8] sm:$0xff]  ;;  %vm1831_vm2 = vcmask 97280  }
  0x22   :  { %v438_v10 = vld [vmem:[#allocation7 + $0x5d0] sm:$0xff]  ;;  %v432_v14 = vld [vmem:[#allocation7 + $0x5a0] sm:$0xff]  ;;  %v337_v15 = vld [vmem:[#allocation7 + $0x2a8] sm:$0xff]  ;;  %vm1955_vm3 = vcmask 23552   ;;  %s2253_s15 = smov [#allocation14]   ;;  %s1964_s6 = sshll.u32 %s2794_s10, 4  ;;  %s1965_s6 = int_to_ptr.hbm [resolvable:$true] %s1964_s6 }
  0x23   :  { %542 = vmatpush.msra.mxu3 %v336_v3  ;;  %v534_v12 = vld [vmem:[#allocation7 + $0x8d0] sm:$0xff]  ;;  %v528_v16 = vld [vmem:[#allocation7 + $0x8a0] sm:$0xff]  ;;  %v331_v19 = vld [vmem:[#allocation7 + $0x278] sm:$0xff]  ;;  %s1962_s16 = sshll.u32 %s2253_s15, 4  ;;  %s2254_s19 = smov 128   ;;  %s1963_s16 = int_to_ptr.vmem [resolvable:$true] %s1962_s16 }
  0x24   :  { %v318_v13 = vld [vmem:[#allocation7 + $0x210] sm:$0xff]  ;;  %v312_v17 = vld [vmem:[#allocation7 + $0x1e0] sm:$0xff]  ;;  %v325_v23 = vld [vmem:[#allocation7 + $0x248] sm:$0xff]  ;;  %s2255_s20 = smov 8  }
  0x25   :  { %543 = vmatpush.msra.mxu3 %v330_v4  ;;  %v426_v18 = vld [vmem:[#allocation7 + $0x570] sm:$0xff]  ;;  %v420_v24 = vld [vmem:[#allocation7 + $0x540] sm:$0xff]  ;;  %v319_v25 = vld [vmem:[#allocation7 + $0x218] sm:$0xff] }
  0x26   :  { %v522_v20 = vld [vmem:[#allocation7 + $0x870] sm:$0xff]  ;;  %v516_v26 = vld [vmem:[#allocation7 + $0x840] sm:$0xff]  ;;  %v313_v29 = vld [vmem:[#allocation7 + $0x1e8] sm:$0xff] }
  0x27   :  { %v146_v7 = vld.sshfl [vmem:[#allocation1] sm:$0xff pattern:$0x75316420]  ;;  %v147_v8 = vld.sshfl [vmem:[#allocation1 + $0x8] sm:$0xff pattern:$0x75316420]  ;;  %544 = vmatpush.msra.mxu3 %v324_v5 }
  0x28   :  { %1984 = vmatpush.msk.msra.mxu0 %vm156_vm0, %v146_v7  ;;  %1987 = vmatpush.msk.msra.mxu1 %vm156_vm0, %v147_v8  ;;  %v148_v9 = vld.sshfl [vmem:[#allocation1 + $0x10] sm:$0xff pattern:$0x75316420]  ;;  %v306_v21 = vld [vmem:[#allocation7 + $0x1b0] sm:$0xff]  ;;  %v300_v27 = vld [vmem:[#allocation7 + $0x180] sm:$0xff] }
  0x29   :  { %1990 = vmatpush.msk.msra.mxu2 %vm156_vm0, %v148_v9  ;;  %1985 = vmatmul.msk.f32.vlgmr.msra.gmra.mxu0 %vm149_vm1, %v137_v6  ;;  %v138_v22 = vld [vmem:[%s2784_s0 + $0x8] sm:$0xff]  ;;  %v408_v32 = vld [vmem:[#allocation7 + $0x4e0] sm:$0xff]  ;;  %v307_v33 = vld [vmem:[#allocation7 + $0x1b8] sm:$0xff] }
  0x2a   :  { %1988 = vmatmul.msk.f32.vlgmr.msra.gmra.mxu1 %vm149_vm1, %v137_v6  ;;  %1991 = vmatmul.msk.f32.vlgmr.msra.gmra.mxu2 %vm149_vm1, %v137_v6  ;;  %v414_v28 = vld [vmem:[#allocation7 + $0x510] sm:$0xff]  ;;  %v504_v34 = vld [vmem:[#allocation7 + $0x7e0] sm:$0xff]  ;;  %v301_v37 = vld [vmem:[#allocation7 + $0x188] sm:$0xff] }
  0x2b   :  { %564 = vmatpush.msrb.mxu0 %v438_v10  ;;  %610 = vmatpush.msrb.mxu2 %v343_v11  ;;  %v510_v30 = vld [vmem:[#allocation7 + $0x810] sm:$0xff]  ;;  %v288_v35 = vld [vmem:[#allocation7 + $0x120] sm:$0xff]  ;;  %v295_v41 = vld [vmem:[#allocation7 + $0x158] sm:$0xff] }
  0x2c   :  { %587 = vmatpush.msrb.mxu1 %v534_v12  ;;  %545 = vmatpush.msra.mxu3 %v318_v13  ;;  %v294_v31 = vld [vmem:[#allocation7 + $0x150] sm:$0xff]  ;;  %v396_v40 = vld [vmem:[#allocation7 + $0x480] sm:$0xff]  ;;  %v289_v45 = vld [vmem:[#allocation7 + $0x128] sm:$0xff] }
  0x2d   :  { %565 = vmatpush.msrb.mxu0 %v432_v14  ;;  %611 = vmatpush.msrb.mxu2 %v337_v15  ;;  %v402_v36 = vld [vmem:[#allocation7 + $0x4b0] sm:$0xff]  ;;  %v492_v42 = vld [vmem:[#allocation7 + $0x780] sm:$0xff]  ;;  %v283_v49 = vld [vmem:[#allocation7 + $0xf8] sm:$0xff] }
  0x2e   :  { %588 = vmatpush.msrb.mxu1 %v528_v16  ;;  %546 = vmatpush.msra.mxu3 %v312_v17  ;;  %v498_v38 = vld [vmem:[#allocation7 + $0x7b0] sm:$0xff]  ;;  %v276_v43 = vld [vmem:[#allocation7 + $0xc0] sm:$0xff]  ;;  %v277_v53 = vld [vmem:[#allocation7 + $0xc8] sm:$0xff] }
  0x2f   :  { %566 = vmatpush.msrb.mxu0 %v426_v18  ;;  %612 = vmatpush.msrb.mxu2 %v331_v19  ;;  %v282_v39 = vld [vmem:[#allocation7 + $0xf0] sm:$0xff]  ;;  %v384_v48 = vld [vmem:[#allocation7 + $0x420] sm:$0xff]  ;;  %v271_v57 = vld [vmem:[#allocation7 + $0x98] sm:$0xff] }
  0x30   :  { %589 = vmatpush.msrb.mxu1 %v522_v20  ;;  %547 = vmatpush.msra.mxu3 %v306_v21  ;;  %v390_v44 = vld [vmem:[#allocation7 + $0x450] sm:$0xff]  ;;  %v480_v50 = vld [vmem:[#allocation7 + $0x720] sm:$0xff]  ;;  %v265_v61 = vld [vmem:[#allocation7 + $0x68] sm:$0xff] }
  0x31   :  { %1986 = vmatmul.msk.f32.gmra.mxu0 %vm149_vm1, %v138_v22  ;;  %613 = vmatpush.msrb.mxu2 %v325_v23  ;;  %v486_v46 = vld [vmem:[#allocation7 + $0x750] sm:$0xff]  ;;  %v264_v51 = vld [vmem:[#allocation7 + $0x60] sm:$0xff]  ;;  %v439_v63 = vld [vmem:[#allocation7 + $0x5d8] sm:$0xff] }
  0x32   :  { %1989 = vmatmul.msk.f32.gmra.mxu1 %vm149_vm1, %v138_v22  ;;  %1992 = vmatmul.msk.f32.gmra.mxu2 %vm149_vm1, %v138_v22  ;;  %v270_v47 = vld [vmem:[#allocation7 + $0x90] sm:$0xff]  ;;  %v372_v56 = vld [vmem:[#allocation7 + $0x3c0] sm:$0xff]  ;;  %v259_v1 = vld [vmem:[#allocation7 + $0x38] sm:$0xff] }
  0x33   :  { %567 = vmatpush.msrb.mxu0 %v420_v24  ;;  %614 = vmatpush.msrb.mxu2 %v319_v25  ;;  %v378_v52 = vld [vmem:[#allocation7 + $0x3f0] sm:$0xff]  ;;  %v468_v58 = vld [vmem:[#allocation7 + $0x6c0] sm:$0xff]  ;;  %v433_v3 = vld [vmem:[#allocation7 + $0x5a8] sm:$0xff] }
  0x34   :  { %590 = vmatpush.msrb.mxu1 %v516_v26  ;;  %548 = vmatpush.msra.mxu3 %v300_v27  ;;  %v474_v54 = vld [vmem:[#allocation7 + $0x6f0] sm:$0xff]  ;;  %v252_v59 = vld [vmem:[#allocation7] sm:$0xff]  ;;  %v253_v5 = vld [vmem:[#allocation7 + $0x8] sm:$0xff] }
  0x35   :  { %568 = vmatpush.msrb.mxu0 %v414_v28  ;;  %615 = vmatpush.msrb.mxu2 %v313_v29  ;;  %v258_v55 = vld [vmem:[#allocation7 + $0x30] sm:$0xff]  ;;  %v360_v0 = vld [vmem:[#allocation7 + $0x360] sm:$0xff]  ;;  %v427_v9 = vld [vmem:[#allocation7 + $0x578] sm:$0xff] }
  0x36   :  { %591 = vmatpush.msrb.mxu1 %v510_v30  ;;  %549 = vmatpush.msra.mxu3 %v294_v31  ;;  %v366_v60 = vld [vmem:[#allocation7 + $0x390] sm:$0xff]  ;;  %v456_v2 = vld [vmem:[#allocation7 + $0x660] sm:$0xff]  ;;  %v535_v10 = vld [vmem:[#allocation7 + $0x8d8] sm:$0xff] }
  0x37   :  { %569 = vmatpush.msrb.mxu0 %v408_v32  ;;  %616 = vmatpush.msrb.mxu2 %v307_v33  ;;  %v462_v62 = vld [vmem:[#allocation7 + $0x690] sm:$0xff]  ;;  %v440_v6 = vld [vmem:[#allocation7 + $0x5e0] sm:$0xff]  ;;  %v421_v13 = vld [vmem:[#allocation7 + $0x548] sm:$0xff] }
  0x38   :  { %592 = vmatpush.msrb.mxu1 %v504_v34  ;;  %550 = vmatpush.msra.mxu3 %v288_v35  ;;  %v354_v4 = vld [vmem:[#allocation7 + $0x330] sm:$0xff]  ;;  %v348_v8 = vld [vmem:[#allocation7 + $0x300] sm:$0xff]  ;;  %v529_v14 = vld [vmem:[#allocation7 + $0x8a8] sm:$0xff] }
  0x39   :  { %570 = vmatpush.msrb.mxu0 %v402_v36  ;;  %617 = vmatpush.msrb.mxu2 %v301_v37  ;;  %v450_v7 = vld [vmem:[#allocation7 + $0x630] sm:$0xff]  ;;  %v444_v12 = vld [vmem:[#allocation7 + $0x600] sm:$0xff]  ;;  %v415_v17 = vld [vmem:[#allocation7 + $0x518] sm:$0xff] }
  0x3a   :  { %593 = vmatpush.msrb.mxu1 %v498_v38  ;;  %551 = vmatpush.msra.mxu3 %v282_v39  ;;  %v434_v11 = vld [vmem:[#allocation7 + $0x5b0] sm:$0xff]  ;;  %v428_v15 = vld [vmem:[#allocation7 + $0x580] sm:$0xff]  ;;  %v523_v18 = vld [vmem:[#allocation7 + $0x878] sm:$0xff] }
  0x3b   :  { %571 = vmatpush.msrb.mxu0 %v396_v40  ;;  %618 = vmatpush.msrb.mxu2 %v295_v41  ;;  %v344_v16 = vld [vmem:[#allocation7 + $0x2e0] sm:$0xff]  ;;  %v422_v19 = vld [vmem:[#allocation7 + $0x550] sm:$0xff]  ;;  %v409_v21 = vld [vmem:[#allocation7 + $0x4e8] sm:$0xff] }
  0x3c   :  { %594 = vmatpush.msrb.mxu1 %v492_v42  ;;  %552 = vmatpush.msra.mxu3 %v276_v43  ;;  %v338_v20 = vld [vmem:[#allocation7 + $0x2b0] sm:$0xff]  ;;  %v517_v22 = vld [vmem:[#allocation7 + $0x848] sm:$0xff]  ;;  %v416_v23 = vld [vmem:[#allocation7 + $0x520] sm:$0xff] }
  0x3d   :  { %572 = vmatpush.msrb.mxu0 %v390_v44  ;;  %619 = vmatpush.msrb.mxu2 %v289_v45  ;;  %v332_v24 = vld [vmem:[#allocation7 + $0x280] sm:$0xff]  ;;  %v403_v25 = vld [vmem:[#allocation7 + $0x4b8] sm:$0xff]  ;;  %v410_v27 = vld [vmem:[#allocation7 + $0x4f0] sm:$0xff] }
  0x3e   :  { %595 = vmatpush.msrb.mxu1 %v486_v46  ;;  %553 = vmatpush.msra.mxu3 %v270_v47  ;;  %v511_v26 = vld [vmem:[#allocation7 + $0x818] sm:$0xff]  ;;  %v326_v28 = vld [vmem:[#allocation7 + $0x250] sm:$0xff]  ;;  %v397_v29 = vld [vmem:[#allocation7 + $0x488] sm:$0xff] }
  0x3f   :  { %573 = vmatpush.msrb.mxu0 %v384_v48  ;;  %620 = vmatpush.msrb.mxu2 %v283_v49  ;;  %v505_v30 = vld [vmem:[#allocation7 + $0x7e8] sm:$0xff]  ;;  %v404_v31 = vld [vmem:[#allocation7 + $0x4c0] sm:$0xff]  ;;  %v391_v33 = vld [vmem:[#allocation7 + $0x458] sm:$0xff] }
  0x40   :  { %596 = vmatpush.msrb.mxu1 %v480_v50  ;;  %554 = vmatpush.msra.mxu3 %v264_v51  ;;  %v320_v32 = vld [vmem:[#allocation7 + $0x220] sm:$0xff]  ;;  %v499_v34 = vld [vmem:[#allocation7 + $0x7b8] sm:$0xff]  ;;  %v398_v35 = vld [vmem:[#allocation7 + $0x490] sm:$0xff] }
  0x41   :  { %574 = vmatpush.msrb.mxu0 %v378_v52  ;;  %621 = vmatpush.msrb.mxu2 %v277_v53  ;;  %v314_v36 = vld [vmem:[#allocation7 + $0x1f0] sm:$0xff]  ;;  %v385_v37 = vld [vmem:[#allocation7 + $0x428] sm:$0xff]  ;;  %v392_v39 = vld [vmem:[#allocation7 + $0x460] sm:$0xff] }
  0x42   :  { %597 = vmatpush.msrb.mxu1 %v474_v54  ;;  %555 = vmatpush.msra.mxu3 %v258_v55  ;;  %v493_v38 = vld [vmem:[#allocation7 + $0x788] sm:$0xff]  ;;  %v308_v40 = vld [vmem:[#allocation7 + $0x1c0] sm:$0xff]  ;;  %v379_v41 = vld [vmem:[#allocation7 + $0x3f8] sm:$0xff] }
  0x43   :  { %575 = vmatpush.msrb.mxu0 %v372_v56  ;;  %622 = vmatpush.msrb.mxu2 %v271_v57  ;;  %v487_v42 = vld [vmem:[#allocation7 + $0x758] sm:$0xff]  ;;  %v386_v43 = vld [vmem:[#allocation7 + $0x430] sm:$0xff]  ;;  %v373_v45 = vld [vmem:[#allocation7 + $0x3c8] sm:$0xff] }
  0x44   :  { %598 = vmatpush.msrb.mxu1 %v468_v58  ;;  %556 = vmatpush.msra.mxu3 %v252_v59  ;;  %v302_v44 = vld [vmem:[#allocation7 + $0x190] sm:$0xff]  ;;  %v481_v46 = vld [vmem:[#allocation7 + $0x728] sm:$0xff]  ;;  %v380_v47 = vld [vmem:[#allocation7 + $0x400] sm:$0xff] }
  0x45   :  { %576 = vmatpush.msrb.mxu0 %v366_v60  ;;  %623 = vmatpush.msrb.mxu2 %v265_v61  ;;  %v296_v48 = vld [vmem:[#allocation7 + $0x160] sm:$0xff]  ;;  %v367_v49 = vld [vmem:[#allocation7 + $0x398] sm:$0xff]  ;;  %v374_v51 = vld [vmem:[#allocation7 + $0x3d0] sm:$0xff] }
  0x46   :  { %599 = vmatpush.msrb.mxu1 %v462_v62  ;;  %633 = vmatpush.msrb.mxu3 %v439_v63  ;;  %v475_v50 = vld [vmem:[#allocation7 + $0x6f8] sm:$0xff]  ;;  %v290_v52 = vld [vmem:[#allocation7 + $0x130] sm:$0xff]  ;;  %v469_v53 = vld [vmem:[#allocation7 + $0x6c8] sm:$0xff] }
  0x47   :  { %577 = vmatpush.msrb.mxu0 %v360_v0  ;;  %624 = vmatpush.msrb.mxu2 %v259_v1  ;;  %v368_v54 = vld [vmem:[#allocation7 + $0x3a0] sm:$0xff]  ;;  %v463_v55 = vld [vmem:[#allocation7 + $0x698] sm:$0xff]  ;;  %v361_v56 = vld [vmem:[#allocation7 + $0x368] sm:$0xff] }
  0x48   :  { %600 = vmatpush.msrb.mxu1 %v456_v2  ;;  %634 = vmatpush.msrb.mxu3 %v433_v3  ;;  %v457_v57 = vld [vmem:[#allocation7 + $0x668] sm:$0xff]  ;;  %v284_v58 = vld [vmem:[#allocation7 + $0x100] sm:$0xff]  ;;  %v362_v59 = vld [vmem:[#allocation7 + $0x370] sm:$0xff] }
  0x49   :  { %578 = vmatpush.msrb.mxu0 %v354_v4  ;;  %625 = vmatpush.msrb.mxu2 %v253_v5  ;;  %v355_v60 = vld [vmem:[#allocation7 + $0x338] sm:$0xff]  ;;  %v278_v62 = vld [vmem:[#allocation7 + $0xd0] sm:$0xff]  ;;  %v356_v63 = vld [vmem:[#allocation7 + $0x340] sm:$0xff] }
  0x4a   :  { %601 = vmatpush.msrb.mxu1 %v450_v7  ;;  %635 = vmatpush.msrb.mxu3 %v427_v9  ;;  %v451_v61 = vld [vmem:[#allocation7 + $0x638] sm:$0xff]  ;;  %v349_v0 = vld [vmem:[#allocation7 + $0x308] sm:$0xff]  ;;  %v272_v2 = vld [vmem:[#allocation7 + $0xa0] sm:$0xff] }
  0x4b   :  { %702 = vmatpush.msra.mxu2 %v440_v6  ;;  %579 = vmatpush.msrb.mxu0 %v348_v8  ;;  %v445_v1 = vld [vmem:[#allocation7 + $0x608] sm:$0xff]  ;;  %v350_v3 = vld [vmem:[#allocation7 + $0x310] sm:$0xff]  ;;  %v260_v5 = vld [vmem:[#allocation7 + $0x40] sm:$0xff] }
  0x4c   :  { %602 = vmatpush.msrb.mxu1 %v444_v12  ;;  %636 = vmatpush.msrb.mxu3 %v421_v13  ;;  %v266_v4 = vld [vmem:[#allocation7 + $0x70] sm:$0xff]  ;;  %v232_v7 = vld [vmem:[#allocation5] sm:$0x7] }
  0x4d   :  { %656 = vmatpush.msra.mxu0 %v535_v10  ;;  %703 = vmatpush.msra.mxu2 %v434_v11  ;;  %v254_v6 = vld [vmem:[#allocation7 + $0x10] sm:$0xff]  ;;  %v234_v8 = vperm.slane %v232_v7, 0  ;;  %v235_v9 = vperm.slane %v232_v7, 1 }
  0x4e   :  { %679 = vmatpush.msra.mxu1 %v344_v16  ;;  %637 = vmatpush.msrb.mxu3 %v415_v17  ;;  %v345_v17 = vld [vmem:[#allocation7 + $0x2e8] sm:$0xff] }
  0x4f   :  { %657 = vmatpush.msra.mxu0 %v529_v14  ;;  %704 = vmatpush.msra.mxu2 %v428_v15  ;;  %v536_v15 = vld [vmem:[#allocation7 + $0x8e0] sm:$0xff] }
  0x50   :  { %680 = vmatpush.msra.mxu1 %v338_v20  ;;  %638 = vmatpush.msrb.mxu3 %v409_v21  ;;  %v530_v20 = vld [vmem:[#allocation7 + $0x8b0] sm:$0xff]  ;;  %v339_v21 = vld [vmem:[#allocation7 + $0x2b8] sm:$0xff] }
  0x51   :  { %658 = vmatpush.msra.mxu0 %v523_v18  ;;  %705 = vmatpush.msra.mxu2 %v422_v19  ;;  %v537_v18 = vld [vmem:[#allocation7 + $0x8e8] sm:$0xff]  ;;  %v236_v19 = vperm.slane %v232_v7, 2  ;;  %v279_v7 = vld [vmem:[#allocation7 + $0xd8] sm:$0xff] }
  0x52   :  { %681 = vmatpush.msra.mxu1 %v332_v24  ;;  %639 = vmatpush.msrb.mxu3 %v403_v25  ;;  %v524_v24 = vld [vmem:[#allocation7 + $0x880] sm:$0xff] }
  0x53   :  { %659 = vmatpush.msra.mxu0 %v517_v22  ;;  %706 = vmatpush.msra.mxu2 %v416_v23  ;;  %v531_v22 = vld [vmem:[#allocation7 + $0x8b8] sm:$0xff] }
  0x54   :  { %682 = vmatpush.msra.mxu1 %v326_v28  ;;  %640 = vmatpush.msrb.mxu3 %v397_v29  ;;  %v525_v28 = vld [vmem:[#allocation7 + $0x888] sm:$0xff] }
  0x55   :  { %660 = vmatpush.msra.mxu0 %v511_v26  ;;  %707 = vmatpush.msra.mxu2 %v410_v27  ;;  %v333_v27 = vld [vmem:[#allocation7 + $0x288] sm:$0xff] }
  0x56   :  { %683 = vmatpush.msra.mxu1 %v320_v32  ;;  %641 = vmatpush.msrb.mxu3 %v391_v33 }
  0x57   :  { %661 = vmatpush.msra.mxu0 %v505_v30  ;;  %708 = vmatpush.msra.mxu2 %v404_v31  ;;  %v518_v31 = vld [vmem:[#allocation7 + $0x850] sm:$0xff] }
  0x58   :  { %684 = vmatpush.msra.mxu1 %v314_v36  ;;  %642 = vmatpush.msrb.mxu3 %v385_v37  ;;  %v519_v37 = vld [vmem:[#allocation7 + $0x858] sm:$0xff] }
  0x59   :  { %662 = vmatpush.msra.mxu0 %v499_v34  ;;  %709 = vmatpush.msra.mxu2 %v398_v35  ;;  %v327_v34 = vld [vmem:[#allocation7 + $0x258] sm:$0xff]  ;;  %v441_v35 = vld [vmem:[#allocation7 + $0x5e8] sm:$0xff] }
  0x5a   :  { %685 = vmatpush.msra.mxu1 %v308_v40  ;;  %643 = vmatpush.msrb.mxu3 %v379_v41  ;;  %v321_v40 = vld [vmem:[#allocation7 + $0x228] sm:$0xff]  ;;  %v435_v41 = vld [vmem:[#allocation7 + $0x5b8] sm:$0xff] }
  0x5b   :  { %663 = vmatpush.msra.mxu0 %v493_v38  ;;  %710 = vmatpush.msra.mxu2 %v392_v39  ;;  %v512_v39 = vld [vmem:[#allocation7 + $0x820] sm:$0xff] }
  0x5c   :  { %686 = vmatpush.msra.mxu1 %v302_v44  ;;  %644 = vmatpush.msrb.mxu3 %v373_v45  ;;  %v506_v44 = vld [vmem:[#allocation7 + $0x7f0] sm:$0xff]  ;;  %v315_v45 = vld [vmem:[#allocation7 + $0x1f8] sm:$0xff] }
  0x5d   :  { %664 = vmatpush.msra.mxu0 %v487_v42  ;;  %711 = vmatpush.msra.mxu2 %v386_v43  ;;  %v513_v42 = vld [vmem:[#allocation7 + $0x828] sm:$0xff] }
  0x5e   :  { %687 = vmatpush.msra.mxu1 %v296_v48  ;;  %645 = vmatpush.msrb.mxu3 %v367_v49  ;;  %v507_v48 = vld [vmem:[#allocation7 + $0x7f8] sm:$0xff]  ;;  %v500_v49 = vld [vmem:[#allocation7 + $0x7c0] sm:$0xff] }
  0x5f   :  { %665 = vmatpush.msra.mxu0 %v481_v46  ;;  %712 = vmatpush.msra.mxu2 %v380_v47  ;;  %v429_v47 = vld [vmem:[#allocation7 + $0x588] sm:$0xff] }
  0x60   :  { %688 = vmatpush.msra.mxu1 %v290_v52  ;;  %646 = vmatpush.msrb.mxu3 %v361_v56  ;;  %v423_v52 = vld [vmem:[#allocation7 + $0x558] sm:$0xff]  ;;  %v417_v56 = vld [vmem:[#allocation7 + $0x528] sm:$0xff] }
  0x61   :  { %666 = vmatpush.msra.mxu0 %v475_v50  ;;  %713 = vmatpush.msra.mxu2 %v374_v51  ;;  %v309_v50 = vld [vmem:[#allocation7 + $0x1c8] sm:$0xff] }
  0x62   :  { %689 = vmatpush.msra.mxu1 %v284_v58  ;;  %647 = vmatpush.msrb.mxu3 %v355_v60  ;;  %v488_v58 = vld [vmem:[#allocation7 + $0x760] sm:$0xff]  ;;  %v411_v60 = vld [vmem:[#allocation7 + $0x4f8] sm:$0xff] }
  0x63   :  { %667 = vmatpush.msra.mxu0 %v469_v53  ;;  %714 = vmatpush.msra.mxu2 %v368_v54  ;;  %v501_v53 = vld [vmem:[#allocation7 + $0x7c8] sm:$0xff]  ;;  %v494_v54 = vld [vmem:[#allocation7 + $0x790] sm:$0xff] }
  0x64   :  { %690 = vmatpush.msra.mxu1 %v278_v62  ;;  %648 = vmatpush.msrb.mxu3 %v349_v0  ;;  %v482_v62 = vld [vmem:[#allocation7 + $0x730] sm:$0xff]  ;;  %v405_v0 = vld [vmem:[#allocation7 + $0x4c8] sm:$0xff] }
  0x65   :  { %668 = vmatpush.msra.mxu0 %v463_v55  ;;  %715 = vmatpush.msra.mxu2 %v362_v59  ;;  %v303_v55 = vld [vmem:[#allocation7 + $0x198] sm:$0xff]  ;;  %v297_v59 = vld [vmem:[#allocation7 + $0x168] sm:$0xff] }
  0x66   :  { %691 = vmatpush.msra.mxu1 %v272_v2  ;;  %v476_v2 = vld [vmem:[#allocation7 + $0x700] sm:$0xff] }
  0x67   :  { %669 = vmatpush.msra.mxu0 %v457_v57  ;;  %716 = vmatpush.msra.mxu2 %v356_v63  ;;  %v495_v57 = vld [vmem:[#allocation7 + $0x798] sm:$0xff] }
  0x68   :  { %692 = vmatpush.msra.mxu1 %v266_v4  ;;  %v291_v63 = vld [vmem:[#allocation7 + $0x138] sm:$0xff] }
  0x69   :  { %670 = vmatpush.msra.mxu0 %v451_v61  ;;  %717 = vmatpush.msra.mxu2 %v350_v3  ;;  %v489_v61 = vld [vmem:[#allocation7 + $0x768] sm:$0xff]  ;;  %v399_v4 = vld [vmem:[#allocation7 + $0x498] sm:$0xff] }
  0x6a   :  { %693 = vmatpush.msra.mxu1 %v260_v5  ;;  %v285_v3 = vld [vmem:[#allocation7 + $0x108] sm:$0xff] }
  0x6b   :  { %671 = vmatpush.msra.mxu0 %v445_v1  ;;  %v483_v1 = vld [vmem:[#allocation7 + $0x738] sm:$0xff]  ;;  %v477_v5 = vld [vmem:[#allocation7 + $0x708] sm:$0xff] }
  0x6c   :  { %694 = vmatpush.msra.mxu1 %v254_v6  ;;  %v470_v6 = vld [vmem:[#allocation7 + $0x6d0] sm:$0xff] }
  0xa6   :  { %v180_v10 = vpop.f32.mrf.mxu0 }
  0xa7   :  { %v240_v11 = vsub.f32 %v180_v10, %v234_v8  ;;  %v203_v12 = vpop.f32.mrf.mxu1  ;;  %v464_v10 = vld [vmem:[#allocation7 + $0x6a0] sm:$0xff] }
  0xa8   :  { %v241_v13 = vsub.f32 %v203_v12, %v235_v9  ;;  %v387_v12 = vld [vmem:[#allocation7 + $0x438] sm:$0xff] }
  0xa9   :  { %v2349_v14 = vmax.f32 %v240_v11, 0.0  ;;  %v273_v11 = vld [vmem:[#allocation7 + $0xa8] sm:$0xff] }
  0xaa   :  { %v2351_v16 = vmax.f32 %v241_v13, 0.0  ;;  %v465_v13 = vld [vmem:[#allocation7 + $0x6a8] sm:$0xff] }
  0xab   :  { %557 = vmatmul.f32.vlgmr.msra.gmra.mxu3 %v2349_v14  ;;  %626 = vmatmul.f32.vlgmr.msrb.gmra.mxu2 %v2349_v14 }
  0xac   :  { %580 = vmatmul.f32.vlgmr.msrb.gmra.mxu0 %v2351_v16  ;;  %725 = vmatpush.msra.mxu3 %v536_v15  ;;  %v458_v15 = vld [vmem:[#allocation7 + $0x670] sm:$0xff] }
  0xad   :  { %748 = vmatpush.msrb.mxu0 %v345_v17  ;;  %794 = vmatpush.msrb.mxu2 %v537_v18  ;;  %v226_v23 = vpop.f32.mrf.mxu2  ;;  %v267_v17 = vld [vmem:[#allocation7 + $0x78] sm:$0xff]  ;;  %v381_v18 = vld [vmem:[#allocation7 + $0x408] sm:$0xff] }
  0xae   :  { %v242_v25 = vsub.f32 %v226_v23, %v236_v19  ;;  %726 = vmatpush.msra.mxu3 %v530_v20  ;;  %v183_v26 = vpop.f32.mrf.mxu0  ;;  %v452_v20 = vld [vmem:[#allocation7 + $0x640] sm:$0xff]  ;;  %v453_v23 = vld [vmem:[#allocation7 + $0x648] sm:$0xff] }
  0xaf   :  { %749 = vmatpush.msrb.mxu0 %v339_v21  ;;  %795 = vmatpush.msrb.mxu2 %v531_v22  ;;  %v243_v29 = vsub.f32 %v183_v26, %v234_v8  ;;  %v206_v30 = vpop.f32.mrf.mxu1  ;;  %v393_v8 = vld [vmem:[#allocation7 + $0x468] sm:$0xff]  ;;  %v375_v22 = vld [vmem:[#allocation7 + $0x3d8] sm:$0xff] }
  0xb0   :  { %v2356_v32 = vmax.f32 %v242_v25, 0.0  ;;  %v244_v33 = vsub.f32 %v206_v30, %v235_v9  ;;  %727 = vmatpush.msra.mxu3 %v524_v24  ;;  %v471_v9 = vld [vmem:[#allocation7 + $0x6d8] sm:$0xff]  ;;  %v261_v21 = vld [vmem:[#allocation7 + $0x48] sm:$0xff]  ;;  %v446_v24 = vld [vmem:[#allocation7 + $0x610] sm:$0xff] }
  0xb1   :  { %v2358_v36 = vmax.f32 %v243_v29, 0.0  ;;  %750 = vmatpush.msrb.mxu0 %v333_v27  ;;  %796 = vmatpush.msrb.mxu2 %v525_v28  ;;  %v255_v25 = vld [vmem:[#allocation7 + $0x18] sm:$0xff]  ;;  %v369_v26 = vld [vmem:[#allocation7 + $0x3a8] sm:$0xff]  ;;  %v346_v28 = vld [vmem:[#allocation7 + $0x2f0] sm:$0xff] }
  0xb2   :  { %v2360_v38 = vmax.f32 %v244_v33, 0.0  ;;  %603 = vmatmul.f32.vlgmr.msrb.gmra.mxu1 %v2356_v32  ;;  %728 = vmatpush.msra.mxu3 %v518_v31  ;;  %v447_v27 = vld [vmem:[#allocation7 + $0x618] sm:$0xff]  ;;  %v442_v29 = vld [vmem:[#allocation7 + $0x5f0] sm:$0xff]  ;;  %v340_v33 = vld [vmem:[#allocation7 + $0x2c0] sm:$0xff] }
  0xb3   :  { %751 = vmatpush.msrb.mxu0 %v327_v34  ;;  %771 = vmatpush.msrb.mxu1 %v441_v35  ;;  %v347_v30 = vld [vmem:[#allocation7 + $0x2f8] sm:$0xff]  ;;  %v436_v34 = vld [vmem:[#allocation7 + $0x5c0] sm:$0xff]  ;;  %v341_v35 = vld [vmem:[#allocation7 + $0x2c8] sm:$0xff] }
  0xb4   :  { %797 = vmatpush.msrb.mxu2 %v519_v37  ;;  %560 = vmatmul.f32.gmra.mxu3 %v2358_v36  ;;  %v363_v31 = vld [vmem:[#allocation7 + $0x378] sm:$0xff]  ;;  %v357_v37 = vld [vmem:[#allocation7 + $0x348] sm:$0xff] }
  0xb5   :  { %583 = vmatmul.f32.gmra.mxu0 %v2360_v38  ;;  %629 = vmatmul.f32.gmra.mxu2 %v2358_v36  ;;  %v229_v43 = vpop.f32.mrf.mxu2 }
  0xb6   :  { %729 = vmatpush.msra.mxu3 %v512_v39  ;;  %752 = vmatpush.msrb.mxu0 %v321_v40  ;;  %v245_v46 = vsub.f32 %v229_v43, %v236_v19  ;;  %v459_v19 = vld [vmem:[#allocation7 + $0x678] sm:$0xff]  ;;  %v334_v39 = vld [vmem:[#allocation7 + $0x290] sm:$0xff]  ;;  %v328_v43 = vld [vmem:[#allocation7 + $0x260] sm:$0xff] }
  0xb7   :  { %772 = vmatpush.msrb.mxu1 %v435_v41  ;;  %798 = vmatpush.msrb.mxu2 %v513_v42  ;;  %v430_v40 = vld [vmem:[#allocation7 + $0x590] sm:$0xff]  ;;  %v335_v41 = vld [vmem:[#allocation7 + $0x298] sm:$0xff] }
  0xb8   :  { %v2366_v51 = vmax.f32 %v245_v46, 0.0  ;;  %730 = vmatpush.msra.mxu3 %v506_v44  ;;  %753 = vmatpush.msrb.mxu0 %v315_v45  ;;  %v351_v42 = vld [vmem:[#allocation7 + $0x318] sm:$0xff]  ;;  %v424_v44 = vld [vmem:[#allocation7 + $0x560] sm:$0xff]  ;;  %v538_v45 = vld [vmem:[#allocation7 + $0x8f0] sm:$0xff] }
  0xb9   :  { %773 = vmatpush.msrb.mxu1 %v429_v47  ;;  %799 = vmatpush.msrb.mxu2 %v507_v48  ;;  %v329_v46 = vld [vmem:[#allocation7 + $0x268] sm:$0xff]  ;;  %v322_v47 = vld [vmem:[#allocation7 + $0x230] sm:$0xff] }
  0xba   :  { %731 = vmatpush.msra.mxu3 %v500_v49  ;;  %754 = vmatpush.msrb.mxu0 %v309_v50  ;;  %v418_v48 = vld [vmem:[#allocation7 + $0x530] sm:$0xff]  ;;  %v532_v49 = vld [vmem:[#allocation7 + $0x8c0] sm:$0xff]  ;;  %v323_v50 = vld [vmem:[#allocation7 + $0x238] sm:$0xff] }
  0xbb   :  { %774 = vmatpush.msrb.mxu1 %v423_v52  ;;  %800 = vmatpush.msrb.mxu2 %v501_v53  ;;  %v316_v52 = vld [vmem:[#allocation7 + $0x200] sm:$0xff] }
  0xbc   :  { %606 = vmatmul.f32.gmra.mxu1 %v2366_v51  ;;  %732 = vmatpush.msra.mxu3 %v494_v54  ;;  %v412_v53 = vld [vmem:[#allocation7 + $0x500] sm:$0xff]  ;;  %v526_v54 = vld [vmem:[#allocation7 + $0x890] sm:$0xff] }
  0xbd   :  { %755 = vmatpush.msrb.mxu0 %v303_v55  ;;  %775 = vmatpush.msrb.mxu1 %v417_v56  ;;  %v317_v55 = vld [vmem:[#allocation7 + $0x208] sm:$0xff]  ;;  %v310_v56 = vld [vmem:[#allocation7 + $0x1d0] sm:$0xff] }
  0xbe   :  { %801 = vmatpush.msrb.mxu2 %v495_v57  ;;  %649 = vmatmul.f32.vlgmr.msrb.gmra.mxu3 %v2351_v16  ;;  %v406_v57 = vld [vmem:[#allocation7 + $0x4d0] sm:$0xff] }
  0xbf   :  { %672 = vmatmul.f32.vlgmr.msra.gmra.mxu0 %v2356_v32  ;;  %718 = vmatmul.f32.vlgmr.msra.gmra.mxu2 %v2351_v16 }
  0xc0   :  { %733 = vmatpush.msra.mxu3 %v488_v58  ;;  %756 = vmatpush.msrb.mxu0 %v297_v59  ;;  %v520_v58 = vld [vmem:[#allocation7 + $0x860] sm:$0xff]  ;;  %v311_v59 = vld [vmem:[#allocation7 + $0x1d8] sm:$0xff] }
  0xc1   :  { %776 = vmatpush.msrb.mxu1 %v411_v60  ;;  %802 = vmatpush.msrb.mxu2 %v489_v61  ;;  %v304_v60 = vld [vmem:[#allocation7 + $0x1a0] sm:$0xff] }
  0xc2   :  { %734 = vmatpush.msra.mxu3 %v482_v62  ;;  %757 = vmatpush.msrb.mxu0 %v291_v63  ;;  %v400_v61 = vld [vmem:[#allocation7 + $0x4a0] sm:$0xff]  ;;  %v514_v62 = vld [vmem:[#allocation7 + $0x830] sm:$0xff]  ;;  %v305_v63 = vld [vmem:[#allocation7 + $0x1a8] sm:$0xff] }
  0xc3   :  { %777 = vmatpush.msrb.mxu1 %v405_v0  ;;  %803 = vmatpush.msrb.mxu2 %v483_v1  ;;  %v298_v0 = vld [vmem:[#allocation7 + $0x170] sm:$0xff] }
  0xc4   :  { %735 = vmatpush.msra.mxu3 %v476_v2  ;;  %758 = vmatpush.msrb.mxu0 %v285_v3  ;;  %v394_v1 = vld [vmem:[#allocation7 + $0x470] sm:$0xff]  ;;  %v508_v2 = vld [vmem:[#allocation7 + $0x800] sm:$0xff]  ;;  %v299_v3 = vld [vmem:[#allocation7 + $0x178] sm:$0xff] }
  0xc5   :  { %778 = vmatpush.msrb.mxu1 %v399_v4  ;;  %804 = vmatpush.msrb.mxu2 %v477_v5  ;;  %v292_v4 = vld [vmem:[#allocation7 + $0x140] sm:$0xff] }
  0xc6   :  { %695 = vmatmul.f32.vlgmr.msra.gmra.mxu1 %v2349_v14  ;;  %736 = vmatpush.msra.mxu3 %v470_v6  ;;  %v388_v5 = vld [vmem:[#allocation7 + $0x440] sm:$0xff]  ;;  %v502_v6 = vld [vmem:[#allocation7 + $0x7d0] sm:$0xff] }
  0xc7   :  { %759 = vmatpush.msrb.mxu0 %v279_v7  ;;  %779 = vmatpush.msrb.mxu1 %v393_v8  ;;  %v293_v7 = vld [vmem:[#allocation7 + $0x148] sm:$0xff]  ;;  %v286_v8 = vld [vmem:[#allocation7 + $0x110] sm:$0xff] }
  0xc8   :  { %805 = vmatpush.msrb.mxu2 %v471_v9  ;;  %652 = vmatmul.f32.gmra.mxu3 %v2360_v38  ;;  %v382_v9 = vld [vmem:[#allocation7 + $0x410] sm:$0xff] }
  0xc9   :  { %675 = vmatmul.f32.gmra.mxu0 %v2366_v51  ;;  %721 = vmatmul.f32.gmra.mxu2 %v2360_v38 }
  0xca   :  { %737 = vmatpush.msra.mxu3 %v464_v10  ;;  %760 = vmatpush.msrb.mxu0 %v273_v11  ;;  %v496_v10 = vld [vmem:[#allocation7 + $0x7a0] sm:$0xff]  ;;  %v287_v11 = vld [vmem:[#allocation7 + $0x118] sm:$0xff] }
  0xcb   :  { %780 = vmatpush.msrb.mxu1 %v387_v12  ;;  %806 = vmatpush.msrb.mxu2 %v465_v13  ;;  %v280_v12 = vld [vmem:[#allocation7 + $0xe0] sm:$0xff] }
  0xcc   :  { %738 = vmatpush.msra.mxu3 %v458_v15  ;;  %761 = vmatpush.msrb.mxu0 %v267_v17  ;;  %v376_v13 = vld [vmem:[#allocation7 + $0x3e0] sm:$0xff]  ;;  %v490_v15 = vld [vmem:[#allocation7 + $0x770] sm:$0xff]  ;;  %v281_v17 = vld [vmem:[#allocation7 + $0xe8] sm:$0xff] }
  0xcd   :  { %781 = vmatpush.msrb.mxu1 %v381_v18  ;;  %807 = vmatpush.msrb.mxu2 %v459_v19  ;;  %v274_v18 = vld [vmem:[#allocation7 + $0xb0] sm:$0xff] }
  0xce   :  { %739 = vmatpush.msra.mxu3 %v452_v20  ;;  %762 = vmatpush.msrb.mxu0 %v261_v21  ;;  %v370_v19 = vld [vmem:[#allocation7 + $0x3b0] sm:$0xff]  ;;  %v484_v20 = vld [vmem:[#allocation7 + $0x740] sm:$0xff]  ;;  %v275_v21 = vld [vmem:[#allocation7 + $0xb8] sm:$0xff] }
  0xcf   :  { %782 = vmatpush.msrb.mxu1 %v375_v22  ;;  %808 = vmatpush.msrb.mxu2 %v453_v23  ;;  %v268_v22 = vld [vmem:[#allocation7 + $0x80] sm:$0xff] }
  0xd0   :  { %698 = vmatmul.f32.gmra.mxu1 %v2358_v36  ;;  %740 = vmatpush.msra.mxu3 %v446_v24  ;;  %v364_v23 = vld [vmem:[#allocation7 + $0x380] sm:$0xff]  ;;  %v478_v24 = vld [vmem:[#allocation7 + $0x710] sm:$0xff] }
  0xd1   :  { %763 = vmatpush.msrb.mxu0 %v255_v25  ;;  %783 = vmatpush.msrb.mxu1 %v369_v26  ;;  %v269_v25 = vld [vmem:[#allocation7 + $0x88] sm:$0xff]  ;;  %v262_v26 = vld [vmem:[#allocation7 + $0x50] sm:$0xff] }
  0xd2   :  { %809 = vmatpush.msrb.mxu2 %v447_v27  ;;  %817 = vmatpush.msrb.mxu3 %v346_v28  ;;  %v358_v27 = vld [vmem:[#allocation7 + $0x350] sm:$0xff]  ;;  %v472_v28 = vld [vmem:[#allocation7 + $0x6e0] sm:$0xff] }
  0xd3   :  { %840 = vmatpush.msra.mxu0 %v442_v29  ;;  %741 = vmatmul.f32.vlgmr.msra.gmra.mxu3 %v2356_v32  ;;  %v263_v29 = vld [vmem:[#allocation7 + $0x58] sm:$0xff] }
  0xd4   :  { %886 = vmatpush.msra.mxu2 %v347_v30  ;;  %764 = vmatmul.f32.vlgmr.msrb.gmra.mxu0 %v2349_v14  ;;  %v256_v30 = vld [vmem:[#allocation7 + $0x20] sm:$0xff] }
  0xd5   :  { %784 = vmatpush.msrb.mxu1 %v363_v31  ;;  %818 = vmatpush.msrb.mxu3 %v340_v33  ;;  %v352_v31 = vld [vmem:[#allocation7 + $0x320] sm:$0xff]  ;;  %v466_v33 = vld [vmem:[#allocation7 + $0x6b0] sm:$0xff] }
  0xd6   :  { %841 = vmatpush.msra.mxu0 %v436_v34  ;;  %887 = vmatpush.msra.mxu2 %v341_v35  ;;  %v257_v34 = vld [vmem:[#allocation7 + $0x28] sm:$0xff]  ;;  %v443_v35 = vld [vmem:[#allocation7 + $0x5f8] sm:$0xff] }
  0xd7   :  { %785 = vmatpush.msrb.mxu1 %v357_v37  ;;  %810 = vmatmul.f32.vlgmr.msrb.gmra.mxu2 %v2356_v32  ;;  %v539_v37 = vld [vmem:[#allocation7 + $0x8f8] sm:$0xff] }
  0xd8   :  { %819 = vmatpush.msrb.mxu3 %v334_v39  ;;  %842 = vmatpush.msra.mxu0 %v430_v40  ;;  %v460_v39 = vld [vmem:[#allocation7 + $0x680] sm:$0xff]  ;;  %v437_v40 = vld [vmem:[#allocation7 + $0x5c8] sm:$0xff] }
  0xd9   :  { %888 = vmatpush.msra.mxu2 %v335_v41  ;;  %786 = vmatpush.msrb.mxu1 %v351_v42  ;;  %v533_v41 = vld [vmem:[#allocation7 + $0x8c8] sm:$0xff]  ;;  %v454_v42 = vld [vmem:[#allocation7 + $0x650] sm:$0xff] }
  0xda   :  { %820 = vmatpush.msrb.mxu3 %v328_v43  ;;  %843 = vmatpush.msra.mxu0 %v424_v44  ;;  %v431_v43 = vld [vmem:[#allocation7 + $0x598] sm:$0xff] }
  0xdb   :  { %863 = vmatpush.msra.mxu1 %v538_v45  ;;  %889 = vmatpush.msra.mxu2 %v329_v46  ;;  %v527_v44 = vld [vmem:[#allocation7 + $0x898] sm:$0xff]  ;;  %v448_v45 = vld [vmem:[#allocation7 + $0x620] sm:$0xff]  ;;  %v425_v46 = vld [vmem:[#allocation7 + $0x568] sm:$0xff] }
  0xdc   :  { %787 = vmatmul.f32.vlgmr.msrb.gmra.mxu1 %v2351_v16  ;;  %821 = vmatpush.msrb.mxu3 %v322_v47  ;;  %v521_v47 = vld [vmem:[#allocation7 + $0x868] sm:$0xff] }
  0xdd   :  { %844 = vmatpush.msra.mxu0 %v418_v48  ;;  %864 = vmatpush.msra.mxu1 %v532_v49  ;;  %v515_v48 = vld [vmem:[#allocation7 + $0x838] sm:$0xff]  ;;  %v413_v49 = vld [vmem:[#allocation7 + $0x508] sm:$0xff] }
  0xde   :  { %890 = vmatpush.msra.mxu2 %v323_v50  ;;  %744 = vmatmul.f32.gmra.mxu3 %v2366_v51  ;;  %v509_v50 = vld [vmem:[#allocation7 + $0x808] sm:$0xff] }
  0xdf   :  { %767 = vmatmul.f32.gmra.mxu0 %v2358_v36  ;;  %822 = vmatpush.msrb.mxu3 %v316_v52  ;;  %v1037_v52 = vld [vmem:[#allocation10 + $0x168] sm:$0xff] }
  0xe0   :  { %845 = vmatpush.msra.mxu0 %v412_v53  ;;  %865 = vmatpush.msra.mxu1 %v526_v54  ;;  %v1034_v53 = vld [vmem:[#allocation10 + $0x150] sm:$0xff] }
  0xe1   :  { %891 = vmatpush.msra.mxu2 %v317_v55  ;;  %823 = vmatpush.msrb.mxu3 %v310_v56  ;;  %v407_v54 = vld [vmem:[#allocation7 + $0x4d8] sm:$0xff]  ;;  %v401_v56 = vld [vmem:[#allocation7 + $0x4a8] sm:$0xff] }
  0xe2   :  { %813 = vmatmul.f32.gmra.mxu2 %v2366_v51  ;;  %846 = vmatpush.msra.mxu0 %v406_v57  ;;  %v503_v55 = vld [vmem:[#allocation7 + $0x7d8] sm:$0xff]  ;;  %v497_v57 = vld [vmem:[#allocation7 + $0x7a8] sm:$0xff] }
  0xe3   :  { %866 = vmatpush.msra.mxu1 %v520_v58  ;;  %892 = vmatpush.msra.mxu2 %v311_v59  ;;  %v1031_v58 = vld [vmem:[#allocation10 + $0x138] sm:$0xff] }
  0xe4   :  { %824 = vmatpush.msrb.mxu3 %v304_v60  ;;  %847 = vmatpush.msra.mxu0 %v400_v61  ;;  %v491_v59 = vld [vmem:[#allocation7 + $0x778] sm:$0xff]  ;;  %v1028_v60 = vld [vmem:[#allocation10 + $0x120] sm:$0xff] }
  0xe5   :  { %867 = vmatpush.msra.mxu1 %v514_v62  ;;  %893 = vmatpush.msra.mxu2 %v305_v63  ;;  %v389_v61 = vld [vmem:[#allocation7 + $0x448] sm:$0xff] }
  0xe6   :  { %790 = vmatmul.f32.gmra.mxu1 %v2360_v38  ;;  %825 = vmatpush.msrb.mxu3 %v298_v0  ;;  %v485_v62 = vld [vmem:[#allocation7 + $0x748] sm:$0xff] }
  0xe7   :  { %848 = vmatpush.msra.mxu0 %v394_v1  ;;  %868 = vmatpush.msra.mxu1 %v508_v2  ;;  %v1025_v63 = vld [vmem:[#allocation10 + $0x108] sm:$0xff]  ;;  %v383_v1 = vld [vmem:[#allocation7 + $0x418] sm:$0xff] }
  0xe8   :  { %894 = vmatpush.msra.mxu2 %v299_v3  ;;  %826 = vmatpush.msrb.mxu3 %v292_v4  ;;  %v1085_v0 = vld [vmem:[#allocation10 + $0x2e8] sm:$0xff]  ;;  %v479_v2 = vld [vmem:[#allocation7 + $0x718] sm:$0xff] }
  0xe9   :  { %849 = vmatpush.msra.mxu0 %v388_v5  ;;  %869 = vmatpush.msra.mxu1 %v502_v6  ;;  %v1022_v3 = vld [vmem:[#allocation10 + $0xf0] sm:$0xff]  ;;  %v377_v5 = vld [vmem:[#allocation7 + $0x3e8] sm:$0xff] }
  0xea   :  { %895 = vmatpush.msra.mxu2 %v293_v7  ;;  %827 = vmatpush.msrb.mxu3 %v286_v8  ;;  %v1082_v4 = vld [vmem:[#allocation10 + $0x2d0] sm:$0xff]  ;;  %v473_v6 = vld [vmem:[#allocation7 + $0x6e8] sm:$0xff]  ;;  %v1019_v7 = vld [vmem:[#allocation10 + $0xd8] sm:$0xff] }
  0xeb   :  { %850 = vmatpush.msra.mxu0 %v382_v9  ;;  %870 = vmatpush.msra.mxu1 %v496_v10  ;;  %v1079_v8 = vld [vmem:[#allocation10 + $0x2b8] sm:$0xff] }
  0xec   :  { %896 = vmatpush.msra.mxu2 %v287_v11  ;;  %828 = vmatpush.msrb.mxu3 %v280_v12  ;;  %v371_v9 = vld [vmem:[#allocation7 + $0x3b8] sm:$0xff]  ;;  %v1016_v11 = vld [vmem:[#allocation10 + $0xc0] sm:$0xff] }
  0xed   :  { %851 = vmatpush.msra.mxu0 %v376_v13  ;;  %871 = vmatpush.msra.mxu1 %v490_v15  ;;  %v467_v10 = vld [vmem:[#allocation7 + $0x6b8] sm:$0xff]  ;;  %v365_v12 = vld [vmem:[#allocation7 + $0x388] sm:$0xff] }
  0xee   :  { %897 = vmatpush.msra.mxu2 %v281_v17  ;;  %829 = vmatpush.msrb.mxu3 %v274_v18  ;;  %v461_v13 = vld [vmem:[#allocation7 + $0x688] sm:$0xff]  ;;  %v359_v17 = vld [vmem:[#allocation7 + $0x358] sm:$0xff] }
  0xef   :  { %852 = vmatpush.msra.mxu0 %v370_v19  ;;  %872 = vmatpush.msra.mxu1 %v484_v20  ;;  %v1013_v15 = vld [vmem:[#allocation10 + $0xa8] sm:$0xff]  ;;  %v455_v18 = vld [vmem:[#allocation7 + $0x658] sm:$0xff] }
  0xf0   :  { %898 = vmatpush.msra.mxu2 %v275_v21  ;;  %830 = vmatpush.msrb.mxu3 %v268_v22  ;;  %v1010_v19 = vld [vmem:[#allocation10 + $0x90] sm:$0xff]  ;;  %v353_v20 = vld [vmem:[#allocation7 + $0x328] sm:$0xff] }
  0xf1   :  { %853 = vmatpush.msra.mxu0 %v364_v23  ;;  %873 = vmatpush.msra.mxu1 %v478_v24  ;;  %v449_v21 = vld [vmem:[#allocation7 + $0x628] sm:$0xff] }
  0xf2   :  { %899 = vmatpush.msra.mxu2 %v269_v25  ;;  %831 = vmatpush.msrb.mxu3 %v262_v26  ;;  %v1076_v22 = vld [vmem:[#allocation10 + $0x2a0] sm:$0xff]  ;;  %v1133_v23 = vld [vmem:[#allocation10 + $0x468] sm:$0xff]  ;;  %v1007_v25 = vld [vmem:[#allocation10 + $0x78] sm:$0xff] }
  0xf3   :  { %854 = vmatpush.msra.mxu0 %v358_v27  ;;  %874 = vmatpush.msra.mxu1 %v472_v28  ;;  %v1181_v24 = vld [vmem:[#allocation10 + $0x5e8] sm:$0xff]  ;;  %v1130_v27 = vld [vmem:[#allocation10 + $0x450] sm:$0xff] }
  0xf4   :  { %900 = vmatpush.msra.mxu2 %v263_v29  ;;  %832 = vmatpush.msrb.mxu3 %v256_v30  ;;  %v1073_v26 = vld [vmem:[#allocation10 + $0x288] sm:$0xff]  ;;  %v1178_v28 = vld [vmem:[#allocation10 + $0x5d0] sm:$0xff]  ;;  %v1004_v29 = vld [vmem:[#allocation10 + $0x60] sm:$0xff] }
  0xf5   :  { %855 = vmatpush.msra.mxu0 %v352_v31  ;;  %875 = vmatpush.msra.mxu1 %v466_v33  ;;  %v1070_v30 = vld [vmem:[#allocation10 + $0x270] sm:$0xff]  ;;  %v1127_v31 = vld [vmem:[#allocation10 + $0x438] sm:$0xff] }
  0xf6   :  { %901 = vmatpush.msra.mxu2 %v257_v34  ;;  %833 = vmatmul.f32.vlgmr.msrb.gmra.mxu3 %v2349_v14  ;;  %v1175_v33 = vld [vmem:[#allocation10 + $0x5b8] sm:$0xff]  ;;  %v1001_v34 = vld [vmem:[#allocation10 + $0x48] sm:$0xff] }
  0xf7   :  { %856 = vmatmul.f32.vlgmr.msra.gmra.mxu0 %v2351_v16  ;;  %902 = vmatmul.f32.vlgmr.msra.gmra.mxu2 %v2349_v14  ;;  %v419_v14 = vld [vmem:[#allocation7 + $0x538] sm:$0xff] }
  0xf8   :  { %909 = vmatpush.msra.mxu3 %v443_v35  ;;  %932 = vmatpush.msrb.mxu0 %v539_v37  ;;  %v1067_v35 = vld [vmem:[#allocation10 + $0x258] sm:$0xff]  ;;  %v1124_v37 = vld [vmem:[#allocation10 + $0x420] sm:$0xff] }
  0xf9   :  { %876 = vmatpush.msra.mxu1 %v460_v39  ;;  %1304 = vmatpush.msrb.mxu2 %v1085_v0  ;;  %v1172_v39 = vld [vmem:[#allocation10 + $0x5a0] sm:$0xff]  ;;  %v2397_v0 = vld [vmem:[#allocation8] sm:$0x3f] }
  0xfa   :  { %910 = vmatpush.msra.mxu3 %v437_v40  ;;  %933 = vmatpush.msrb.mxu0 %v533_v41  ;;  %v998_v40 = vld [vmem:[#allocation10 + $0x30] sm:$0xff]  ;;  %v1064_v41 = vld [vmem:[#allocation10 + $0x240] sm:$0xff] }
  0xfb   :  { %877 = vmatpush.msra.mxu1 %v454_v42  ;;  %1305 = vmatpush.msrb.mxu2 %v1082_v4  ;;  %v1118_v42 = vld [vmem:[#allocation10 + $0x3f0] sm:$0xff]  ;;  %v1043_v4 = vld [vmem:[#allocation10 + $0x198] sm:$0xff] }
  0xfc   :  { %911 = vmatpush.msra.mxu3 %v431_v43  ;;  %934 = vmatpush.msrb.mxu0 %v527_v44  ;;  %v1166_v43 = vld [vmem:[#allocation10 + $0x570] sm:$0xff]  ;;  %v995_v44 = vld [vmem:[#allocation10 + $0x18] sm:$0xff] }
  0xfd   :  { %878 = vmatpush.msra.mxu1 %v448_v45  ;;  %1306 = vmatpush.msrb.mxu2 %v1079_v8  ;;  %v1061_v45 = vld [vmem:[#allocation10 + $0x228] sm:$0xff] }
  0xfe   :  { %879 = vmatmul.f32.vlgmr.msra.gmra.mxu1 %v2356_v32  ;;  %912 = vmatpush.msra.mxu3 %v425_v46  ;;  %v1115_v46 = vld [vmem:[#allocation10 + $0x3d8] sm:$0xff] }
  0xff   :  { %935 = vmatpush.msrb.mxu0 %v521_v47  ;;  %836 = vmatmul.f32.gmra.mxu3 %v2358_v36  ;;  %v1163_v47 = vld [vmem:[#allocation10 + $0x558] sm:$0xff] }
 0x100   :  { %859 = vmatmul.f32.gmra.mxu0 %v2360_v38  ;;  %905 = vmatmul.f32.gmra.mxu2 %v2358_v36  ;;  %v395_v36 = vld [vmem:[#allocation7 + $0x478] sm:$0xff] }
 0x101   :  { %913 = vmatpush.msra.mxu3 %v419_v14  ;;  %936 = vmatpush.msrb.mxu0 %v515_v48  ;;  %v992_v14 = vld [vmem:[#allocation10] sm:$0xff]  ;;  %v1058_v48 = vld [vmem:[#allocation10 + $0x210] sm:$0xff] }
 0x102   :  { %1281 = vmatpush.msrb.mxu1 %v1037_v52  ;;  %1307 = vmatpush.msrb.mxu2 %v1076_v22  ;;  %v1109_v52 = vld [vmem:[#allocation10 + $0x3a8] sm:$0xff]  ;;  %v1208_v22 = vld [vmem:[#allocation10 + $0x6c0] sm:$0xff] }
 0x103   :  { %914 = vmatpush.msra.mxu3 %v413_v49  ;;  %937 = vmatpush.msrb.mxu0 %v509_v50  ;;  %v1112_v49 = vld [vmem:[#allocation10 + $0x3c0] sm:$0xff] }
 0x104   :  { %1282 = vmatpush.msrb.mxu1 %v1034_v53  ;;  %1308 = vmatpush.msrb.mxu2 %v1073_v26  ;;  %v1160_v50 = vld [vmem:[#allocation10 + $0x540] sm:$0xff]  ;;  %v1157_v53 = vld [vmem:[#allocation10 + $0x528] sm:$0xff]  ;;  %v1038_v26 = vld [vmem:[#allocation10 + $0x170] sm:$0xff] }
 0x105   :  { %915 = vmatpush.msra.mxu3 %v407_v54  ;;  %938 = vmatpush.msrb.mxu0 %v503_v55  ;;  %v1226_v54 = vld [vmem:[#allocation10 + $0x750] sm:$0xff] }
 0x106   :  { %882 = vmatmul.f32.gmra.mxu1 %v2366_v51  ;;  %1309 = vmatpush.msrb.mxu2 %v1070_v30  ;;  %v1106_v55 = vld [vmem:[#allocation10 + $0x390] sm:$0xff] }
 0x107   :  { %916 = vmatpush.msra.mxu3 %v401_v56  ;;  %939 = vmatpush.msrb.mxu0 %v497_v57  ;;  %v1154_v56 = vld [vmem:[#allocation10 + $0x510] sm:$0xff]  ;;  %v1052_v57 = vld [vmem:[#allocation10 + $0x1e0] sm:$0xff] }
 0x108   :  { %1283 = vmatpush.msrb.mxu1 %v1031_v58  ;;  %1310 = vmatpush.msrb.mxu2 %v1067_v35  ;;  %v1223_v58 = vld [vmem:[#allocation10 + $0x738] sm:$0xff]  ;;  %v1202_v35 = vld [vmem:[#allocation10 + $0x690] sm:$0xff] }
 0x109   :  { %917 = vmatpush.msra.mxu3 %v395_v36  ;;  %940 = vmatpush.msrb.mxu0 %v491_v59  ;;  %v1049_v36 = vld [vmem:[#allocation10 + $0x1c8] sm:$0xff]  ;;  %v1103_v59 = vld [vmem:[#allocation10 + $0x378] sm:$0xff] }
 0x10a   :  { %1284 = vmatpush.msrb.mxu1 %v1028_v60  ;;  %1311 = vmatpush.msrb.mxu2 %v1064_v41  ;;  %v1151_v60 = vld [vmem:[#allocation10 + $0x4f8] sm:$0xff]  ;;  %v1080_v41 = vld [vmem:[#allocation10 + $0x2c0] sm:$0xff] }
 0x10b   :  { %918 = vmatpush.msra.mxu3 %v389_v61  ;;  %941 = vmatpush.msrb.mxu0 %v485_v62  ;;  %v1220_v61 = vld [vmem:[#allocation10 + $0x720] sm:$0xff]  ;;  %v1046_v62 = vld [vmem:[#allocation10 + $0x1b0] sm:$0xff] }
 0x10c   :  { %1285 = vmatpush.msrb.mxu1 %v1025_v63  ;;  %1312 = vmatpush.msrb.mxu2 %v1061_v45  ;;  %v1100_v63 = vld [vmem:[#allocation10 + $0x360] sm:$0xff]  ;;  %v1077_v45 = vld [vmem:[#allocation10 + $0x2a8] sm:$0xff] }
 0x10d   :  { %919 = vmatpush.msra.mxu3 %v383_v1  ;;  %942 = vmatpush.msrb.mxu0 %v479_v2  ;;  %v1148_v1 = vld [vmem:[#allocation10 + $0x4e0] sm:$0xff] }
 0x10e   :  { %1286 = vmatpush.msrb.mxu1 %v1022_v3  ;;  %1313 = vmatpush.msrb.mxu2 %v1058_v48  ;;  %v1217_v3 = vld [vmem:[#allocation10 + $0x708] sm:$0xff] }
 0x10f   :  { %920 = vmatpush.msra.mxu3 %v377_v5  ;;  %943 = vmatpush.msrb.mxu0 %v473_v6  ;;  %v1097_v6 = vld [vmem:[#allocation10 + $0x348] sm:$0xff] }
 0x110   :  { %1287 = vmatpush.msrb.mxu1 %v1019_v7  ;;  %v1145_v7 = vld [vmem:[#allocation10 + $0x4c8] sm:$0xff] }
 0x111   :  { %921 = vmatpush.msra.mxu3 %v371_v9  ;;  %944 = vmatpush.msrb.mxu0 %v467_v10  ;;  %v956_v10 = vperm.slane %v2397_v0, 0  ;;  %v1193_v48 = vld [vmem:[#allocation10 + $0x648] sm:$0xff] }
 0x112   :  { %1288 = vmatpush.msrb.mxu1 %v1016_v11  ;;  %v1214_v11 = vld [vmem:[#allocation10 + $0x6f0] sm:$0xff] }
 0x113   :  { %922 = vmatpush.msra.mxu3 %v365_v12  ;;  %945 = vmatpush.msrb.mxu0 %v461_v13  ;;  %v1040_v12 = vld [vmem:[#allocation10 + $0x180] sm:$0xff]  ;;  %v1094_v13 = vld [vmem:[#allocation10 + $0x330] sm:$0xff] }
 0x114   :  { %1289 = vmatpush.msrb.mxu1 %v1013_v15  ;;  %v1142_v15 = vld [vmem:[#allocation10 + $0x4b0] sm:$0xff] }
 0x115   :  { %923 = vmatpush.msra.mxu3 %v359_v17  ;;  %946 = vmatpush.msrb.mxu0 %v455_v18  ;;  %v1211_v18 = vld [vmem:[#allocation10 + $0x6d8] sm:$0xff] }
 0x116   :  { %1290 = vmatpush.msrb.mxu1 %v1010_v19  ;;  %v1091_v19 = vld [vmem:[#allocation10 + $0x318] sm:$0xff] }
 0x117   :  { %924 = vmatpush.msra.mxu3 %v353_v20  ;;  %947 = vmatpush.msrb.mxu0 %v449_v21  ;;  %v1139_v20 = vld [vmem:[#allocation10 + $0x498] sm:$0xff] }
 0x118   :  { %925 = vmatmul.f32.vlgmr.msra.gmra.mxu3 %v2351_v16  ;;  %948 = vmatmul.f32.vlgmr.msrb.gmra.mxu0 %v2356_v32  ;;  %v1121_v16 = vld [vmem:[#allocation10 + $0x408] sm:$0xff] }
 0x119   :  { %1327 = vmatpush.msrb.mxu3 %v1133_v23  ;;  %1350 = vmatpush.msra.mxu0 %v1181_v24  ;;  %v1169_v32 = vld [vmem:[#allocation10 + $0x588] sm:$0xff]  ;;  %v1088_v24 = vld [vmem:[#allocation10 + $0x300] sm:$0xff] }
 0x11a   :  { %1291 = vmatpush.msrb.mxu1 %v1007_v25 }
 0x11b   :  { %1328 = vmatpush.msrb.mxu3 %v1130_v27  ;;  %1351 = vmatpush.msra.mxu0 %v1178_v28  ;;  %v1136_v27 = vld [vmem:[#allocation10 + $0x480] sm:$0xff]  ;;  %v1205_v28 = vld [vmem:[#allocation10 + $0x6a8] sm:$0xff] }
 0x11c   :  { %1292 = vmatpush.msrb.mxu1 %v1004_v29  ;;  %v1086_v29 = vld [vmem:[#allocation10 + $0x2f0] sm:$0xff] }
 0x11d   :  { %1329 = vmatpush.msrb.mxu3 %v1127_v31  ;;  %1352 = vmatpush.msra.mxu0 %v1175_v33  ;;  %v1035_v33 = vld [vmem:[#allocation10 + $0x158] sm:$0xff] }
 0x11e   :  { %1293 = vmatpush.msrb.mxu1 %v1001_v34 }
 0x11f   :  { %1330 = vmatpush.msrb.mxu3 %v1124_v37  ;;  %1353 = vmatpush.msra.mxu0 %v1172_v39  ;;  %v1083_v37 = vld [vmem:[#allocation10 + $0x2d8] sm:$0xff] }
 0x120   :  { %928 = vmatmul.f32.gmra.mxu3 %v2360_v38  ;;  %951 = vmatmul.f32.gmra.mxu0 %v2366_v51  ;;  %v1229_v38 = vld [vmem:[#allocation10 + $0x768] sm:$0xff]  ;;  %v1055_v51 = vld [vmem:[#allocation10 + $0x1f8] sm:$0xff] }
 0x121   :  { %1331 = vmatpush.msrb.mxu3 %v1121_v16  ;;  %1354 = vmatpush.msra.mxu0 %v1169_v32  ;;  %v1032_v16 = vld [vmem:[#allocation10 + $0x140] sm:$0xff] }
 0x122   :  { %1294 = vmatpush.msrb.mxu1 %v998_v40  ;;  %1314 = vmatpush.msrb.mxu2 %v1055_v51  ;;  %v1199_v40 = vld [vmem:[#allocation10 + $0x678] sm:$0xff] }
 0x123   :  { %1332 = vmatpush.msrb.mxu3 %v1118_v42  ;;  %1355 = vmatpush.msra.mxu0 %v1166_v43  ;;  %v1029_v42 = vld [vmem:[#allocation10 + $0x128] sm:$0xff]  ;;  %v1071_v51 = vld [vmem:[#allocation10 + $0x278] sm:$0xff] }
 0x124   :  { %1295 = vmatpush.msrb.mxu1 %v995_v44  ;;  %1315 = vmatpush.msrb.mxu2 %v1052_v57  ;;  %v1196_v44 = vld [vmem:[#allocation10 + $0x660] sm:$0xff] }
 0x125   :  { %1333 = vmatpush.msrb.mxu3 %v1115_v46  ;;  %1356 = vmatpush.msra.mxu0 %v1163_v47  ;;  %v1026_v46 = vld [vmem:[#allocation10 + $0x110] sm:$0xff]  ;;  %v1068_v57 = vld [vmem:[#allocation10 + $0x260] sm:$0xff] }
 0x126   :  { %1296 = vmatpush.msrb.mxu1 %v992_v14  ;;  %1316 = vmatpush.msrb.mxu2 %v1049_v36  ;;  %v1017_v36 = vld [vmem:[#allocation10 + $0xc8] sm:$0xff] }
 0x127   :  { %1334 = vmatpush.msrb.mxu3 %v1112_v49  ;;  %1357 = vmatpush.msra.mxu0 %v1160_v50  ;;  %v1074_v49 = vld [vmem:[#allocation10 + $0x290] sm:$0xff]  ;;  %v1023_v50 = vld [vmem:[#allocation10 + $0xf8] sm:$0xff] }
 0x128   :  { %1373 = vmatpush.msra.mxu1 %v1229_v38  ;;  %1317 = vmatpush.msrb.mxu2 %v1046_v62  ;;  %v1190_v38 = vld [vmem:[#allocation10 + $0x630] sm:$0xff] }
 0x129   :  { %1335 = vmatpush.msrb.mxu3 %v1109_v52  ;;  %1358 = vmatpush.msra.mxu0 %v1157_v53  ;;  %v581_v2 = vpop.f32.mrf.mxu0  ;;  %v1020_v53 = vld [vmem:[#allocation10 + $0xe0] sm:$0xff] }
 0x12a   :  { %1374 = vmatpush.msra.mxu1 %v1226_v54  ;;  %1318 = vmatpush.msrb.mxu2 %v1043_v4  ;;  %v1062_v4 = vld [vmem:[#allocation10 + $0x230] sm:$0xff] }
 0x12b   :  { %1336 = vmatpush.msrb.mxu3 %v1106_v55  ;;  %1359 = vmatpush.msra.mxu0 %v1154_v56  ;;  %v957_v55 = vperm.slane %v2397_v0, 1  ;;  %v1187_v56 = vld [vmem:[#allocation10 + $0x618] sm:$0xff] }
 0x12c   :  { %1375 = vmatpush.msra.mxu1 %v1223_v58  ;;  %1319 = vmatpush.msrb.mxu2 %v1040_v12  ;;  %v1271_v12 = vld [vmem:[#allocation10 + $0x8b8] sm:$0xff] }
 0x12d   :  { %1337 = vmatpush.msrb.mxu3 %v1103_v59  ;;  %1360 = vmatpush.msra.mxu0 %v1151_v60  ;;  %v1184_v60 = vld [vmem:[#allocation10 + $0x600] sm:$0xff] }
 0x12e   :  { %v558_v5 = vpop.f32.mrf.mxu3  ;;  %1376 = vmatpush.msra.mxu1 %v1220_v61  ;;  %v627_v23 = vpop.f32.mrf.mxu2  ;;  %v1065_v61 = vld [vmem:[#allocation10 + $0x248] sm:$0xff] }
 0x12f   :  { %1338 = vmatpush.msrb.mxu3 %v1100_v63  ;;  %v582_v8 = vadd.f32 %v581_v2, %v558_v5  ;;  %v604_v9 = vpop.f32.mrf.mxu1  ;;  %1361 = vmatpush.msra.mxu0 %v1148_v1  ;;  %v1014_v63 = vld [vmem:[#allocation10 + $0xb0] sm:$0xff]  ;;  %v1277_v1 = vld [vmem:[#allocation10 + $0x8e8] sm:$0xff]  ;;  %v1011_v5 = vld [vmem:[#allocation10 + $0x98] sm:$0xff] }
 0x130   :  { %1377 = vmatpush.msra.mxu1 %v1217_v3  ;;  %v1134_v2 = vld [vmem:[#allocation10 + $0x470] sm:$0xff]  ;;  %1396 = vmatpush.msra.mxu2 %v1277_v1  ;;  %v1244_v1 = vld [vmem:[#allocation10 + $0x7e0] sm:$0xff] }
 0x131   :  { %v605_v17 = vadd.f32 %v604_v9, %v582_v8  ;;  %1339 = vmatpush.msrb.mxu3 %v1097_v6  ;;  %1362 = vmatpush.msra.mxu0 %v1145_v7  ;;  %v1274_v6 = vld [vmem:[#allocation10 + $0x8d0] sm:$0xff]  ;;  %v1131_v9 = vld [vmem:[#allocation10 + $0x458] sm:$0xff] }
 0x132   :  { %1378 = vmatpush.msra.mxu1 %v1214_v11  ;;  %v584_v30 = vpop.f32.mrf.mxu0  ;;  %v1008_v11 = vld [vmem:[#allocation10 + $0x80] sm:$0xff]  ;;  %1397 = vmatpush.msra.mxu2 %v1274_v6  ;;  %v1098_v6 = vld [vmem:[#allocation10 + $0x350] sm:$0xff] }
 0x133   :  { %v968_v21 = vsub.f32 %v605_v17, %v956_v10  ;;  %1340 = vmatpush.msrb.mxu3 %v1094_v13  ;;  %1363 = vmatpush.msra.mxu0 %v1142_v15  ;;  %v1128_v13 = vld [vmem:[#allocation10 + $0x440] sm:$0xff] }
 0x134   :  { %1379 = vmatpush.msra.mxu1 %v1211_v18  ;;  %v1056_v15 = vld [vmem:[#allocation10 + $0x200] sm:$0xff]  ;;  %v1005_v18 = vld [vmem:[#allocation10 + $0x68] sm:$0xff]  ;;  %1398 = vmatpush.msra.mxu2 %v1271_v12 }
 0x135   :  { %v2400_v25 = vmax.f32 %v968_v21, 0.0  ;;  %1341 = vmatpush.msrb.mxu3 %v1091_v19  ;;  %1364 = vmatpush.msra.mxu0 %v1139_v20  ;;  %v1268_v19 = vld [vmem:[#allocation10 + $0x8a0] sm:$0xff]  ;;  %v1125_v21 = vld [vmem:[#allocation10 + $0x428] sm:$0xff] }
 0x136   :  { %1380 = vmatpush.msra.mxu1 %v1208_v22  ;;  %v1053_v22 = vld [vmem:[#allocation10 + $0x1e8] sm:$0xff]  ;;  %1399 = vmatpush.msra.mxu2 %v1268_v19  ;;  %v1275_v19 = vld [vmem:[#allocation10 + $0x8d8] sm:$0xff] }
 0x137   :  { %1342 = vmatpush.msrb.mxu3 %v1088_v24  ;;  %v561_v31 = vpop.f32.mrf.mxu3  ;;  %1297 = vmatmul.f32.vlgmr.msrb.gmra.mxu1 %v2400_v25  ;;  %v1002_v24 = vld [vmem:[#allocation10 + $0x50] sm:$0xff] }
 0x138   :  { %v585_v34 = vadd.f32 %v584_v30, %v561_v31  ;;  %1365 = vmatpush.msra.mxu0 %v1136_v27  ;;  %1381 = vmatpush.msra.mxu1 %v1205_v28  ;;  %v630_v14 = vpop.f32.mrf.mxu2  ;;  %v1122_v28 = vld [vmem:[#allocation10 + $0x410] sm:$0xff]  ;;  %v999_v31 = vld [vmem:[#allocation10 + $0x38] sm:$0xff] }
 0x139   :  { %1419 = vmatpush.msra.mxu3 %v1038_v26  ;;  %v607_v39 = vpop.f32.mrf.mxu1  ;;  %v1265_v26 = vld [vmem:[#allocation10 + $0x888] sm:$0xff] }
 0x13a   :  { %1442 = vmatpush.msrb.mxu0 %v1086_v29  ;;  %v608_v32 = vadd.f32 %v607_v39, %v585_v34  ;;  %1382 = vmatpush.msra.mxu1 %v1202_v35  ;;  %v1050_v29 = vld [vmem:[#allocation10 + $0x1d0] sm:$0xff]  ;;  %v1119_v35 = vld [vmem:[#allocation10 + $0x3f8] sm:$0xff]  ;;  %v996_v39 = vld [vmem:[#allocation10 + $0x20] sm:$0xff] }
 0x13b   :  { %1420 = vmatpush.msra.mxu3 %v1035_v33  ;;  %v1262_v33 = vld [vmem:[#allocation10 + $0x870] sm:$0xff]  ;;  %1400 = vmatpush.msra.mxu2 %v1265_v26 }
 0x13c   :  { %1443 = vmatpush.msrb.mxu0 %v1083_v37  ;;  %v974_v43 = vsub.f32 %v608_v32, %v956_v10  ;;  %1383 = vmatpush.msra.mxu1 %v1199_v40  ;;  %v673_v58 = vpop.f32.mrf.mxu0  ;;  %v1059_v10 = vld [vmem:[#allocation10 + $0x218] sm:$0xff] }
 0x13d   :  { %1421 = vmatpush.msra.mxu3 %v1032_v16  ;;  %v1047_v37 = vld [vmem:[#allocation10 + $0x1b8] sm:$0xff]  ;;  %1401 = vmatpush.msra.mxu2 %v1262_v33 }
 0x13e   :  { %1444 = vmatpush.msrb.mxu0 %v1080_v41  ;;  %v2403_v47 = vmax.f32 %v974_v43, 0.0  ;;  %1384 = vmatpush.msra.mxu1 %v1196_v44  ;;  %v1259_v40 = vld [vmem:[#allocation10 + $0x858] sm:$0xff]  ;;  %v1116_v41 = vld [vmem:[#allocation10 + $0x3e0] sm:$0xff] }
 0x13f   :  { %1422 = vmatpush.msra.mxu3 %v1029_v42  ;;  %v993_v42 = vld [vmem:[#allocation10 + $0x8] sm:$0xff]  ;;  %v1044_v43 = vld [vmem:[#allocation10 + $0x1a0] sm:$0xff]  ;;  %1402 = vmatpush.msra.mxu2 %v1259_v40 }
 0x140   :  { %1445 = vmatpush.msrb.mxu0 %v1077_v45  ;;  %1300 = vmatmul.f32.gmra.mxu1 %v2403_v47  ;;  %v1256_v44 = vld [vmem:[#allocation10 + $0x840] sm:$0xff]  ;;  %v1113_v45 = vld [vmem:[#allocation10 + $0x3c8] sm:$0xff] }
 0x141   :  { %1423 = vmatpush.msra.mxu3 %v1026_v46  ;;  %v650_v52 = vpop.f32.mrf.mxu3  ;;  %1385 = vmatpush.msra.mxu1 %v1193_v48  ;;  %v1041_v46 = vld [vmem:[#allocation10 + $0x188] sm:$0xff]  ;;  %v958_v48 = vperm.slane %v2397_v0, 2  ;;  %v1212_v40 = vld [vmem:[#allocation10 + $0x6e0] sm:$0xff] }
 0x142   :  { %1446 = vmatpush.msrb.mxu0 %v1074_v49  ;;  %v651_v54 = vadd.f32 %v650_v52, %v627_v23  ;;  %v2413_v8 = vpop.f32.mrf.mxu2  ;;  %v1253_v49 = vld [vmem:[#allocation10 + $0x828] sm:$0xff]  ;;  %1403 = vmatpush.msra.mxu2 %v1256_v44  ;;  %v1250_v52 = vld [vmem:[#allocation10 + $0x810] sm:$0xff] }
 0x143   :  { %1424 = vmatpush.msra.mxu3 %v1023_v50  ;;  %1386 = vmatpush.msra.mxu1 %v1190_v38  ;;  %v2407_v62 = vpop.f32.mrf.mxu1  ;;  %v1110_v50 = vld [vmem:[#allocation10 + $0x3b0] sm:$0xff]  ;;  %v1209_v44 = vld [vmem:[#allocation10 + $0x6c8] sm:$0xff] }
 0x144   :  { %1447 = vmatpush.msrb.mxu0 %v1071_v51  ;;  %v674_v59 = vadd.f32 %v673_v58, %v651_v54  ;;  %1404 = vmatpush.msra.mxu2 %v1253_v49  ;;  %v1173_v49 = vld [vmem:[#allocation10 + $0x5a8] sm:$0xff] }
 0x145   :  { %1425 = vmatpush.msra.mxu3 %v1020_v53  ;;  %1387 = vmatpush.msra.mxu1 %v1187_v56  ;;  %v1107_v53 = vld [vmem:[#allocation10 + $0x398] sm:$0xff] }
 0x146   :  { %1448 = vmatpush.msrb.mxu0 %v1068_v57  ;;  %v969_v3 = vsub.f32 %v674_v59, %v957_v55  ;;  %v676_v23 = vpop.f32.mrf.mxu0  ;;  %v1247_v59 = vld [vmem:[#allocation10 + $0x7f8] sm:$0xff]  ;;  %1405 = vmatpush.msra.mxu2 %v1250_v52  ;;  %v1200_v52 = vld [vmem:[#allocation10 + $0x680] sm:$0xff] }
 0x147   :  { %1426 = vmatpush.msra.mxu3 %v1017_v36  ;;  %1388 = vmatpush.msra.mxu1 %v1184_v60  ;;  %v959_v36 = vperm.slane %v2397_v0, 3  ;;  %v1104_v60 = vld [vmem:[#allocation10 + $0x380] sm:$0xff] }
 0x148   :  { %1449 = vmatpush.msrb.mxu0 %v1065_v61  ;;  %v2411_v7 = vmax.f32 %v969_v3, 0.0  ;;  %1406 = vmatpush.msra.mxu2 %v1247_v59  ;;  %v1161_v59 = vld [vmem:[#allocation10 + $0x548] sm:$0xff] }
 0x149   :  { %1427 = vmatpush.msra.mxu3 %v1014_v63  ;;  %1465 = vmatpush.msrb.mxu1 %v1134_v2  ;;  %v1230_v63 = vld [vmem:[#allocation10 + $0x770] sm:$0xff]  ;;  %v1101_v2 = vld [vmem:[#allocation10 + $0x368] sm:$0xff] }
 0x14a   :  { %1450 = vmatpush.msrb.mxu0 %v1062_v4  ;;  %1320 = vmatmul.f32.vlgmr.msrb.gmra.mxu2 %v2411_v7  ;;  %v1227_v4 = vld [vmem:[#allocation10 + $0x758] sm:$0xff] }
 0x14b   :  { %1428 = vmatpush.msra.mxu3 %v1011_v5  ;;  %v653_v17 = vpop.f32.mrf.mxu3  ;;  %1466 = vmatpush.msrb.mxu1 %v1131_v9  ;;  %v1241_v5 = vld [vmem:[#allocation10 + $0x7c8] sm:$0xff] }
 0x14c   :  { %1451 = vmatpush.msrb.mxu0 %v1059_v10  ;;  %v654_v20 = vadd.f32 %v653_v17, %v630_v14  ;;  %v722_v16 = vpop.f32.mrf.mxu2  ;;  %v720_v14 = vadd.f32 %v2413_v8, %v2407_v62  ;;  %1407 = vmatpush.msra.mxu2 %v1244_v1  ;;  %v1224_v10 = vld [vmem:[#allocation10 + $0x740] sm:$0xff] }
 0x14d   :  { %1429 = vmatpush.msra.mxu3 %v1008_v11  ;;  %1467 = vmatpush.msrb.mxu1 %v1128_v13  ;;  %v2416_v30 = vpop.f32.mrf.mxu1  ;;  %v1278_v11 = vld [vmem:[#allocation10 + $0x8f0] sm:$0xff] }
 0x14e   :  { %1452 = vmatpush.msrb.mxu0 %v1056_v15  ;;  %v677_v27 = vadd.f32 %v676_v23, %v654_v20  ;;  %v723_v8 = vadd.f32 %v722_v16, %v2416_v30  ;;  %1408 = vmatpush.msra.mxu2 %v1241_v5  ;;  %v1238_v13 = vld [vmem:[#allocation10 + $0x7b0] sm:$0xff]  ;;  %v1095_v15 = vld [vmem:[#allocation10 + $0x338] sm:$0xff]  ;;  %v1092_v23 = vld [vmem:[#allocation10 + $0x320] sm:$0xff] }
 0x14f   :  { %1430 = vmatpush.msra.mxu3 %v1005_v18  ;;  %1468 = vmatpush.msrb.mxu1 %v1125_v21  ;;  %v1221_v18 = vld [vmem:[#allocation10 + $0x728] sm:$0xff]  ;;  %v1232_v30 = vld [vmem:[#allocation10 + $0x780] sm:$0xff]  ;;  %v1155_v5 = vld [vmem:[#allocation10 + $0x518] sm:$0xff] }
 0x150   :  { %1453 = vmatpush.msrb.mxu0 %v1053_v22  ;;  %v975_v34 = vsub.f32 %v677_v27, %v957_v55  ;;  %v1235_v22 = vld [vmem:[#allocation10 + $0x798] sm:$0xff]  ;;  %v1218_v27 = vld [vmem:[#allocation10 + $0x710] sm:$0xff]  ;;  %1409 = vmatpush.msra.mxu2 %v1238_v13 }
 0x151   :  { %1431 = vmatpush.msra.mxu3 %v1002_v24  ;;  %1469 = vmatpush.msrb.mxu1 %v1122_v28  ;;  %v765_v54 = vpop.f32.mrf.mxu0  ;;  %v1272_v28 = vld [vmem:[#allocation10 + $0x8c0] sm:$0xff]  ;;  %v1135_v13 = vld [vmem:[#allocation10 + $0x478] sm:$0xff] }
 0x152   :  { %1454 = vmatpush.msrb.mxu0 %v1050_v29  ;;  %v2420_v32 = vmax.f32 %v975_v34, 0.0  ;;  %v1215_v34 = vld [vmem:[#allocation10 + $0x6f8] sm:$0xff]  ;;  %1410 = vmatpush.msra.mxu2 %v1235_v22  ;;  %v1233_v22 = vld [vmem:[#allocation10 + $0x788] sm:$0xff] }
 0x153   :  { %1432 = vmatpush.msra.mxu3 %v999_v31  ;;  %1470 = vmatpush.msrb.mxu1 %v1119_v35  ;;  %v1269_v35 = vld [vmem:[#allocation10 + $0x8a8] sm:$0xff] }
 0x154   :  { %1455 = vmatpush.msrb.mxu0 %v1047_v37  ;;  %1323 = vmatmul.f32.gmra.mxu2 %v2420_v32  ;;  %v1089_v37 = vld [vmem:[#allocation10 + $0x308] sm:$0xff] }
 0x155   :  { %1433 = vmatpush.msra.mxu3 %v996_v39  ;;  %1471 = vmatpush.msrb.mxu1 %v1116_v41  ;;  %v1182_v39 = vld [vmem:[#allocation10 + $0x5f0] sm:$0xff] }
 0x156   :  { %1456 = vmatpush.msrb.mxu0 %v1044_v43  ;;  %v742_v38 = vpop.f32.mrf.mxu3  ;;  %v1266_v41 = vld [vmem:[#allocation10 + $0x890] sm:$0xff]  ;;  %1411 = vmatpush.msra.mxu2 %v1232_v30 }
 0x157   :  { %1434 = vmatpush.msra.mxu3 %v993_v42  ;;  %1472 = vmatpush.msrb.mxu1 %v1113_v45  ;;  %v743_v51 = vadd.f32 %v742_v38, %v720_v14  ;;  %v1179_v42 = vld [vmem:[#allocation10 + $0x5d8] sm:$0xff]  ;;  %v1206_v14 = vld [vmem:[#allocation10 + $0x6b0] sm:$0xff]  ;;  %v1257_v38 = vld [vmem:[#allocation10 + $0x848] sm:$0xff] }
 0x158   :  { %1457 = vmatpush.msrb.mxu0 %v1041_v46  ;;  %v1263_v45 = vld [vmem:[#allocation10 + $0x878] sm:$0xff]  ;;  %1488 = vmatpush.msrb.mxu2 %v1182_v39  ;;  %v1176_v46 = vld [vmem:[#allocation10 + $0x5c0] sm:$0xff] }
 0x159   :  { %v788_v55 = vpop.f32.mrf.mxu1  ;;  %1473 = vmatpush.msrb.mxu1 %v1110_v50  ;;  %v970_v56 = vsub.f32 %v743_v51, %v958_v48  ;;  %v1203_v50 = vld [vmem:[#allocation10 + $0x698] sm:$0xff]  ;;  %v1170_v51 = vld [vmem:[#allocation10 + $0x590] sm:$0xff] }
 0x15a   :  { %v789_v57 = vadd.f32 %v788_v55, %v765_v54  ;;  %v811_v58 = vpop.f32.mrf.mxu2  ;;  %1489 = vmatpush.msrb.mxu2 %v1179_v42  ;;  %v1167_v54 = vld [vmem:[#allocation10 + $0x578] sm:$0xff]  ;;  %v1197_v55 = vld [vmem:[#allocation10 + $0x668] sm:$0xff] }
 0x15b   :  { %1474 = vmatpush.msrb.mxu1 %v1107_v53  ;;  %v2427_v61 = vmax.f32 %v970_v56, 0.0  ;;  %v1254_v53 = vld [vmem:[#allocation10 + $0x830] sm:$0xff]  ;;  %v1251_v56 = vld [vmem:[#allocation10 + $0x818] sm:$0xff] }
 0x15c   :  { %v812_v62 = vadd.f32 %v811_v58, %v789_v57  ;;  %v768_v20 = vpop.f32.mrf.mxu0  ;;  %1490 = vmatpush.msrb.mxu2 %v1176_v46  ;;  %v1164_v57 = vld [vmem:[#allocation10 + $0x560] sm:$0xff]  ;;  %v1194_v58 = vld [vmem:[#allocation10 + $0x650] sm:$0xff]  ;;  %v1143_v39 = vld [vmem:[#allocation10 + $0x4b8] sm:$0xff] }
 0x15d   :  { %1475 = vmatpush.msrb.mxu1 %v1104_v60  ;;  %1343 = vmatmul.f32.vlgmr.msrb.gmra.mxu3 %v2427_v61  ;;  %v1191_v60 = vld [vmem:[#allocation10 + $0x638] sm:$0xff]  ;;  %v1030_v46 = vld [vmem:[#allocation10 + $0x130] sm:$0xff] }
 0x15e   :  { %v971_v3 = vsub.f32 %v812_v62, %v959_v36  ;;  %1511 = vmatpush.msrb.mxu3 %v1230_v63  ;;  %1491 = vmatpush.msrb.mxu2 %v1173_v49  ;;  %v1245_v62 = vld [vmem:[#allocation10 + $0x7e8] sm:$0xff]  ;;  %v1158_v63 = vld [vmem:[#allocation10 + $0x530] sm:$0xff] }
 0x15f   :  { %1476 = vmatpush.msrb.mxu1 %v1101_v2  ;;  %v1188_v2 = vld [vmem:[#allocation10 + $0x620] sm:$0xff]  ;;  %v1174_v49 = vld [vmem:[#allocation10 + $0x5b0] sm:$0xff] }
 0x160   :  { %v2431_v9 = vmax.f32 %v971_v3, 0.0  ;;  %1512 = vmatpush.msrb.mxu3 %v1227_v4  ;;  %1492 = vmatpush.msrb.mxu2 %v1170_v51  ;;  %v1242_v3 = vld [vmem:[#allocation10 + $0x7d0] sm:$0xff]  ;;  %v1027_v51 = vld [vmem:[#allocation10 + $0x118] sm:$0xff] }
 0x161   :  { %v745_v12 = vpop.f32.mrf.mxu3  ;;  %1477 = vmatpush.msrb.mxu1 %v1098_v6 }
 0x162   :  { %v746_v17 = vadd.f32 %v745_v12, %v723_v8  ;;  %1366 = vmatmul.f32.vlgmr.msra.gmra.mxu0 %v2431_v9  ;;  %1513 = vmatpush.msrb.mxu3 %v1224_v10  ;;  %v960_v8 = vperm.slane %v2397_v0, 4  ;;  %v1185_v10 = vld [vmem:[#allocation10 + $0x608] sm:$0xff] }
 0x163   :  { %v791_v21 = vpop.f32.mrf.mxu1  ;;  %1534 = vmatpush.msra.mxu0 %v1278_v11  ;;  %1478 = vmatpush.msrb.mxu1 %v1095_v15  ;;  %v1239_v11 = vld [vmem:[#allocation10 + $0x7b8] sm:$0xff]  ;;  %v1152_v15 = vld [vmem:[#allocation10 + $0x500] sm:$0xff] }
 0x164   :  { %v976_v24 = vsub.f32 %v746_v17, %v958_v48  ;;  %v792_v26 = vadd.f32 %v791_v21, %v768_v20  ;;  %1514 = vmatpush.msrb.mxu3 %v1221_v18  ;;  %v1260_v48 = vld [vmem:[#allocation10 + $0x860] sm:$0xff]  ;;  %1493 = vmatpush.msrb.mxu2 %v1167_v54  ;;  %v1149_v20 = vld [vmem:[#allocation10 + $0x4e8] sm:$0xff] }
 0x165   :  { %v814_v29 = vpop.f32.mrf.mxu2  ;;  %1535 = vmatpush.msra.mxu0 %v1275_v19  ;;  %1479 = vmatpush.msrb.mxu1 %v1092_v23  ;;  %v1236_v18 = vld [vmem:[#allocation10 + $0x7a0] sm:$0xff] }
 0x166   :  { %v2434_v31 = vmax.f32 %v976_v24, 0.0  ;;  %v815_v33 = vadd.f32 %v814_v29, %v792_v26  ;;  %1515 = vmatpush.msrb.mxu3 %v1218_v27  ;;  %1494 = vmatpush.msrb.mxu2 %v1164_v57  ;;  %v1132_v19 = vld [vmem:[#allocation10 + $0x460] sm:$0xff]  ;;  %v1039_v24 = vld [vmem:[#allocation10 + $0x178] sm:$0xff]  ;;  %v1129_v26 = vld [vmem:[#allocation10 + $0x448] sm:$0xff] }
 0x167   :  { %1536 = vmatpush.msra.mxu0 %v1272_v28  ;;  %1480 = vmatpush.msrb.mxu1 %v1089_v37  ;;  %v1183_v27 = vld [vmem:[#allocation10 + $0x5f8] sm:$0xff]  ;;  %v1146_v28 = vld [vmem:[#allocation10 + $0x4d0] sm:$0xff]  ;;  %v1180_v37 = vld [vmem:[#allocation10 + $0x5e0] sm:$0xff] }
 0x168   :  { %v977_v16 = vsub.f32 %v815_v33, %v959_v36  ;;  %1346 = vmatmul.f32.gmra.mxu3 %v2434_v31  ;;  %v1248_v36 = vld [vmem:[#allocation10 + $0x800] sm:$0xff]  ;;  %1495 = vmatpush.msrb.mxu2 %v1161_v59  ;;  %v1021_v57 = vld [vmem:[#allocation10 + $0xe8] sm:$0xff]  ;;  %v1018_v59 = vld [vmem:[#allocation10 + $0xd0] sm:$0xff] }
 0x169   :  { %1516 = vmatpush.msrb.mxu3 %v1215_v34  ;;  %1537 = vmatpush.msra.mxu0 %v1269_v35  ;;  %v1036_v33 = vld [vmem:[#allocation10 + $0x160] sm:$0xff]  ;;  %v1126_v34 = vld [vmem:[#allocation10 + $0x430] sm:$0xff] }
 0x16a   :  { %v2437_v43 = vmax.f32 %v977_v16, 0.0  ;;  %1496 = vmatpush.msrb.mxu2 %v1158_v63  ;;  %v1024_v54 = vld [vmem:[#allocation10 + $0x100] sm:$0xff]  ;;  %v1015_v63 = vld [vmem:[#allocation10 + $0xb8] sm:$0xff] }
 0x16b   :  { %1517 = vmatpush.msrb.mxu3 %v1212_v40  ;;  %1538 = vmatpush.msra.mxu0 %v1266_v41  ;;  %v1033_v40 = vld [vmem:[#allocation10 + $0x148] sm:$0xff]  ;;  %v1123_v41 = vld [vmem:[#allocation10 + $0x418] sm:$0xff] }
 0x16c   :  { %1369 = vmatmul.f32.gmra.mxu0 %v2437_v43  ;;  %1497 = vmatpush.msrb.mxu2 %v1155_v5  ;;  %v1156_v5 = vld [vmem:[#allocation10 + $0x520] sm:$0xff] }
 0x16d   :  { %1518 = vmatpush.msrb.mxu3 %v1209_v44  ;;  %1539 = vmatpush.msra.mxu0 %v1263_v45  ;;  %v1177_v44 = vld [vmem:[#allocation10 + $0x5c8] sm:$0xff]  ;;  %v1140_v45 = vld [vmem:[#allocation10 + $0x4a0] sm:$0xff] }
 0x16e   :  { %1498 = vmatpush.msrb.mxu2 %v1152_v15 }
 0x16f   :  { %1519 = vmatpush.msrb.mxu3 %v1206_v14  ;;  %1540 = vmatpush.msra.mxu0 %v1260_v48  ;;  %v1120_v14 = vld [vmem:[#allocation10 + $0x400] sm:$0xff] }
 0x170   :  { %1435 = vmatmul.f32.vlgmr.msra.gmra.mxu3 %v2400_v25  ;;  %1499 = vmatpush.msrb.mxu2 %v1149_v20 }
 0x171   :  { %1520 = vmatpush.msrb.mxu3 %v1203_v50  ;;  %1541 = vmatpush.msra.mxu0 %v1257_v38  ;;  %v1137_v50 = vld [vmem:[#allocation10 + $0x488] sm:$0xff] }
 0x172   :  { %1500 = vmatpush.msrb.mxu2 %v1146_v28  ;;  %v1144_v28 = vld [vmem:[#allocation10 + $0x4c0] sm:$0xff] }
 0x173   :  { %1521 = vmatpush.msrb.mxu3 %v1200_v52  ;;  %1542 = vmatpush.msra.mxu0 %v1254_v53  ;;  %v1117_v52 = vld [vmem:[#allocation10 + $0x3e8] sm:$0xff]  ;;  %v1171_v53 = vld [vmem:[#allocation10 + $0x598] sm:$0xff] }
 0x174   :  { %1458 = vmatmul.f32.vlgmr.msrb.gmra.mxu0 %v2411_v7  ;;  %v857_v1 = vpop.f32.mrf.mxu0  ;;  %1501 = vmatpush.msrb.mxu2 %v1143_v39  ;;  %v1138_v39 = vld [vmem:[#allocation10 + $0x490] sm:$0xff] }
 0x175   :  { %1522 = vmatpush.msrb.mxu3 %v1197_v55  ;;  %1543 = vmatpush.msra.mxu0 %v1251_v56  ;;  %v1114_v55 = vld [vmem:[#allocation10 + $0x3d0] sm:$0xff]  ;;  %v1168_v56 = vld [vmem:[#allocation10 + $0x580] sm:$0xff] }
 0x176   :  { %1502 = vmatpush.msrb.mxu2 %v1140_v45 }
 0x177   :  { %1523 = vmatpush.msrb.mxu3 %v1194_v58  ;;  %1544 = vmatpush.msra.mxu0 %v1248_v36  ;;  %v1111_v58 = vld [vmem:[#allocation10 + $0x3b8] sm:$0xff]  ;;  %v1165_v36 = vld [vmem:[#allocation10 + $0x568] sm:$0xff] }
 0x178   :  { %1438 = vmatmul.f32.gmra.mxu3 %v2403_v47  ;;  %1503 = vmatpush.msrb.mxu2 %v1137_v50  ;;  %v1078_v50 = vld [vmem:[#allocation10 + $0x2b0] sm:$0xff] }
 0x179   :  { %v834_v4 = vpop.f32.mrf.mxu3  ;;  %1524 = vmatpush.msrb.mxu3 %v1191_v60  ;;  %1545 = vmatpush.msra.mxu0 %v1245_v62  ;;  %v1108_v60 = vld [vmem:[#allocation10 + $0x3a0] sm:$0xff]  ;;  %v1162_v62 = vld [vmem:[#allocation10 + $0x550] sm:$0xff] }
 0x17a   :  { %v858_v6 = vadd.f32 %v857_v1, %v834_v4  ;;  %v1105_v1 = vld [vmem:[#allocation10 + $0x388] sm:$0xff]  ;;  %v1102_v4 = vld [vmem:[#allocation10 + $0x370] sm:$0xff]  ;;  %v903_v15 = vpop.f32.mrf.mxu2 }
 0x17b   :  { %v880_v12 = vpop.f32.mrf.mxu1  ;;  %1525 = vmatpush.msrb.mxu3 %v1188_v2  ;;  %1546 = vmatpush.msra.mxu0 %v1242_v3  ;;  %v1159_v2 = vld [vmem:[#allocation10 + $0x538] sm:$0xff]  ;;  %v1012_v3 = vld [vmem:[#allocation10 + $0xa0] sm:$0xff] }
 0x17c   :  { %v881_v17 = vadd.f32 %v880_v12, %v858_v6  ;;  %1461 = vmatmul.f32.gmra.mxu0 %v2420_v32  ;;  %v1009_v6 = vld [vmem:[#allocation10 + $0x88] sm:$0xff]  ;;  %v1096_v12 = vld [vmem:[#allocation10 + $0x340] sm:$0xff] }
 0x17d   :  { %1526 = vmatpush.msrb.mxu3 %v1185_v10  ;;  %1547 = vmatpush.msra.mxu0 %v1239_v11  ;;  %v860_v29 = vpop.f32.mrf.mxu0  ;;  %v1153_v10 = vld [vmem:[#allocation10 + $0x508] sm:$0xff]  ;;  %v1006_v11 = vld [vmem:[#allocation10 + $0x70] sm:$0xff] }
 0x17e   :  { %v972_v21 = vsub.f32 %v881_v17, %v960_v8  ;;  %v1003_v17 = vld [vmem:[#allocation10 + $0x58] sm:$0xff] }
 0x17f   :  { %1603 = vmatpush.msra.mxu3 %v1135_v13  ;;  %1548 = vmatpush.msra.mxu0 %v1236_v18  ;;  %v1150_v13 = vld [vmem:[#allocation10 + $0x4f0] sm:$0xff]  ;;  %v1093_v18 = vld [vmem:[#allocation10 + $0x328] sm:$0xff] }
 0x180   :  { %v2445_v23 = vmax.f32 %v972_v21, 0.0 }
 0x181   :  { %1604 = vmatpush.msra.mxu3 %v1132_v19  ;;  %1549 = vmatpush.msra.mxu0 %v1233_v22  ;;  %v1147_v19 = vld [vmem:[#allocation10 + $0x4d8] sm:$0xff]  ;;  %v1000_v22 = vld [vmem:[#allocation10 + $0x40] sm:$0xff] }
 0x182   :  { %v837_v30 = vpop.f32.mrf.mxu3  ;;  %1389 = vmatmul.f32.vlgmr.msra.gmra.mxu1 %v2445_v23  ;;  %1527 = vmatmul.f32.vlgmr.msrb.gmra.mxu3 %v2445_v23 }
 0x183   :  { %v861_v35 = vadd.f32 %v860_v29, %v837_v30  ;;  %1557 = vmatpush.msra.mxu1 %v1039_v24  ;;  %1605 = vmatpush.msra.mxu3 %v1129_v26  ;;  %v883_v16 = vpop.f32.mrf.mxu1  ;;  %v1090_v24 = vld [vmem:[#allocation10 + $0x310] sm:$0xff]  ;;  %v997_v29 = vld [vmem:[#allocation10 + $0x28] sm:$0xff] }
 0x184   :  { %1626 = vmatpush.msrb.mxu0 %v1183_v27  ;;  %v961_v27 = vperm.slane %v2397_v0, 5  ;;  %v1087_v0 = vld [vmem:[#allocation10 + $0x2f8] sm:$0xff] }
 0x185   :  { %v884_v42 = vadd.f32 %v883_v16, %v861_v35  ;;  %1558 = vmatpush.msra.mxu1 %v1036_v33  ;;  %1606 = vmatpush.msra.mxu3 %v1126_v34  ;;  %v1141_v33 = vld [vmem:[#allocation10 + $0x4a8] sm:$0xff]  ;;  %v994_v34 = vld [vmem:[#allocation10 + $0x10] sm:$0xff] }
 0x186   :  { %1627 = vmatpush.msrb.mxu0 %v1180_v37  ;;  %v1231_v37 = vld [vmem:[#allocation10 + $0x778] sm:$0xff] }
 0x187   :  { %v978_v48 = vsub.f32 %v884_v42, %v960_v8  ;;  %1559 = vmatpush.msra.mxu1 %v1033_v40  ;;  %1607 = vmatpush.msra.mxu3 %v1123_v41  ;;  %v1099_v8 = vld [vmem:[#allocation10 + $0x358] sm:$0xff]  ;;  %v906_v40 = vpop.f32.mrf.mxu2  ;;  %v1228_v42 = vld [vmem:[#allocation10 + $0x760] sm:$0xff] }
 0x188   :  { %1628 = vmatpush.msrb.mxu0 %v1177_v44 }
 0x189   :  { %v2449_v38 = vmax.f32 %v978_v48, 0.0  ;;  %1560 = vmatpush.msra.mxu1 %v1030_v46  ;;  %1608 = vmatpush.msra.mxu3 %v1120_v14  ;;  %v1225_v46 = vld [vmem:[#allocation10 + $0x748] sm:$0xff] }
 0x18a   :  { %1629 = vmatpush.msrb.mxu0 %v1174_v49  ;;  %v1081_v48 = vld [vmem:[#allocation10 + $0x2c8] sm:$0xff]  ;;  %v1222_v49 = vld [vmem:[#allocation10 + $0x730] sm:$0xff] }
 0x18b   :  { %1392 = vmatmul.f32.gmra.mxu1 %v2449_v38  ;;  %1530 = vmatmul.f32.gmra.mxu3 %v2449_v38 }
 0x18c   :  { %1561 = vmatpush.msra.mxu1 %v1027_v51  ;;  %1609 = vmatpush.msra.mxu3 %v1117_v52 }
 0x18d   :  { %1630 = vmatpush.msrb.mxu0 %v1171_v53  ;;  %v1075_v53 = vld [vmem:[#allocation10 + $0x298] sm:$0xff] }
 0x18e   :  { %1562 = vmatpush.msra.mxu1 %v1024_v54  ;;  %1610 = vmatpush.msra.mxu3 %v1114_v55  ;;  %v1219_v54 = vld [vmem:[#allocation10 + $0x718] sm:$0xff]  ;;  %v1216_v55 = vld [vmem:[#allocation10 + $0x700] sm:$0xff] }
 0x18f   :  { %1631 = vmatpush.msrb.mxu0 %v1168_v56  ;;  %v1213_v56 = vld [vmem:[#allocation10 + $0x6e8] sm:$0xff] }
 0x190   :  { %1563 = vmatpush.msra.mxu1 %v1021_v57  ;;  %1611 = vmatpush.msra.mxu3 %v1111_v58  ;;  %v1066_v57 = vld [vmem:[#allocation10 + $0x250] sm:$0xff] }
 0x191   :  { %1632 = vmatpush.msrb.mxu0 %v1165_v36  ;;  %v1210_v58 = vld [vmem:[#allocation10 + $0x6d0] sm:$0xff]  ;;  %v1063_v36 = vld [vmem:[#allocation10 + $0x238] sm:$0xff] }
 0x192   :  { %1564 = vmatpush.msra.mxu1 %v1018_v59  ;;  %1612 = vmatpush.msra.mxu3 %v1108_v60  ;;  %v1207_v59 = vld [vmem:[#allocation10 + $0x6b8] sm:$0xff]  ;;  %v1060_v60 = vld [vmem:[#allocation10 + $0x220] sm:$0xff] }
 0x193   :  { %1481 = vmatmul.f32.vlgmr.msrb.gmra.mxu1 %v2427_v61  ;;  %1633 = vmatpush.msrb.mxu0 %v1162_v62  ;;  %v1204_v62 = vld [vmem:[#allocation10 + $0x6a0] sm:$0xff] }
 0x194   :  { %1565 = vmatpush.msra.mxu1 %v1015_v63  ;;  %1613 = vmatpush.msra.mxu3 %v1105_v1  ;;  %v1201_v63 = vld [vmem:[#allocation10 + $0x688] sm:$0xff]  ;;  %v1054_v1 = vld [vmem:[#allocation10 + $0x1f0] sm:$0xff] }
 0x195   :  { %1634 = vmatpush.msrb.mxu0 %v1159_v2  ;;  %v949_v20 = vpop.f32.mrf.mxu0  ;;  %v1198_v2 = vld [vmem:[#allocation10 + $0x670] sm:$0xff] }
 0x196   :  { %1566 = vmatpush.msra.mxu1 %v1012_v3  ;;  %1614 = vmatpush.msra.mxu3 %v1102_v4  ;;  %v1051_v3 = vld [vmem:[#allocation10 + $0x1d8] sm:$0xff] }
 0x197   :  { %1635 = vmatpush.msrb.mxu0 %v1156_v5  ;;  %v1195_v4 = vld [vmem:[#allocation10 + $0x658] sm:$0xff]  ;;  %v1192_v5 = vld [vmem:[#allocation10 + $0x640] sm:$0xff] }
 0x198   :  { %1567 = vmatpush.msra.mxu1 %v1009_v6  ;;  %1615 = vmatpush.msra.mxu3 %v1099_v8  ;;  %v1045_v6 = vld [vmem:[#allocation10 + $0x1a8] sm:$0xff] }
 0x199   :  { %1636 = vmatpush.msrb.mxu0 %v1153_v10  ;;  %v1189_v8 = vld [vmem:[#allocation10 + $0x628] sm:$0xff]  ;;  %v1042_v10 = vld [vmem:[#allocation10 + $0x190] sm:$0xff] }
 0x19a   :  { %1568 = vmatpush.msra.mxu1 %v1006_v11  ;;  %1616 = vmatpush.msra.mxu3 %v1096_v12  ;;  %v1186_v11 = vld [vmem:[#allocation10 + $0x610] sm:$0xff]  ;;  %v1279_v12 = vld [vmem:[#allocation10 + $0x8f8] sm:$0xff] }
 0x19b   :  { %v926_v21 = vpop.f32.mrf.mxu3  ;;  %1484 = vmatmul.f32.gmra.mxu1 %v2434_v31  ;;  %1637 = vmatpush.msrb.mxu0 %v1150_v13  ;;  %v1276_v13 = vld [vmem:[#allocation10 + $0x8e0] sm:$0xff] }
 0x19c   :  { %v927_v26 = vadd.f32 %v926_v21, %v903_v15  ;;  %1569 = vmatpush.msra.mxu1 %v1003_v17  ;;  %1617 = vmatpush.msra.mxu3 %v1093_v18  ;;  %v1270_v15 = vld [vmem:[#allocation10 + $0x8b0] sm:$0xff]  ;;  %v1267_v17 = vld [vmem:[#allocation10 + $0x898] sm:$0xff]  ;;  %v1264_v18 = vld [vmem:[#allocation10 + $0x880] sm:$0xff] }
 0x19d   :  { %1638 = vmatpush.msrb.mxu0 %v1147_v19  ;;  %v952_v45 = vpop.f32.mrf.mxu0  ;;  %v1261_v19 = vld [vmem:[#allocation10 + $0x868] sm:$0xff]  ;;  %v1252_v21 = vld [vmem:[#allocation10 + $0x820] sm:$0xff] }
 0x19e   :  { %v950_v30 = vadd.f32 %v949_v20, %v927_v26  ;;  %1570 = vmatpush.msra.mxu1 %v1000_v22  ;;  %1618 = vmatpush.msra.mxu3 %v1090_v24  ;;  %v1258_v20 = vld [vmem:[#allocation10 + $0x850] sm:$0xff]  ;;  %v1243_v24 = vld [vmem:[#allocation10 + $0x7d8] sm:$0xff]  ;;  %v1240_v26 = vld [vmem:[#allocation10 + $0x7c0] sm:$0xff] }
 0x19f   :  { %1619 = vmatmul.f32.vlgmr.msra.gmra.mxu3 %v2427_v61  ;;  %1639 = vmatpush.msrb.mxu0 %v1144_v28  ;;  %v1084_v61 = vld [vmem:[#allocation10 + $0x2e0] sm:$0xff]  ;;  %v1246_v22 = vld [vmem:[#allocation10 + $0x7f0] sm:$0xff] }
 0x1a0   :  { %v973_v35 = vsub.f32 %v950_v30, %v961_v27  ;;  %1571 = vmatpush.msra.mxu1 %v997_v29  ;;  %v1848_v28 = vld [vmem:[%s2792_s8 + $0x70] sm:$0xff]  ;;  %v1847_v29 = vld [vmem:[%s2792_s8 + $0x68] sm:$0xff]  ;;  %v1846_v30 = vld [vmem:[%s2792_s8 + $0x60] sm:$0xff] }
 0x1a1   :  { %1640 = vmatpush.msrb.mxu0 %v1141_v33  ;;  %v1729_v33 = vld [vmem:[%s2791_s7 + $0x78] sm:$0xff] }
 0x1a2   :  { %v2457_v16 = vmax.f32 %v973_v35, 0.0  ;;  %1572 = vmatpush.msra.mxu1 %v994_v34  ;;  %v1845_v34 = vld [vmem:[%s2792_s8 + $0x58] sm:$0xff]  ;;  %1762 = vmatpush.msrb.mxu3 %v1729_v33  ;;  %v1728_v35 = vld [vmem:[%s2791_s7 + $0x70] sm:$0xff] }
 0x1a3   :  { %v929_v41 = vpop.f32.mrf.mxu3  ;;  %1641 = vmatpush.msrb.mxu0 %v1138_v39  ;;  %1573 = vmatmul.f32.vlgmr.msra.gmra.mxu1 %v2400_v25  ;;  %v1072_v25 = vld [vmem:[#allocation10 + $0x280] sm:$0xff]  ;;  %v1727_v39 = vld [vmem:[%s2791_s7 + $0x68] sm:$0xff] }
 0x1a4   :  { %1649 = vmatpush.msrb.mxu1 %v1231_v37  ;;  %v930_v44 = vadd.f32 %v929_v41, %v906_v40  ;;  %1412 = vmatmul.f32.vlgmr.msra.gmra.mxu2 %v2457_v16  ;;  %v1844_v37 = vld [vmem:[%s2792_s8 + $0x50] sm:$0xff]  ;;  %v1842_v40 = vld [vmem:[%s2792_s8 + $0x40] sm:$0xff]  ;;  %v1725_v41 = vld [vmem:[%s2791_s7 + $0x58] sm:$0xff] }
 0x1a5   :  { %1550 = vmatmul.f32.vlgmr.msra.gmra.mxu0 %v2457_v16  ;;  %1580 = vmatpush.msra.mxu2 %v1087_v0  ;;  %v1726_v0 = vld [vmem:[%s2791_s7 + $0x60] sm:$0xff] }
 0x1a6   :  { %v953_v14 = vadd.f32 %v952_v45, %v930_v44  ;;  %1650 = vmatpush.msrb.mxu1 %v1228_v42  ;;  %1763 = vmatpush.msrb.mxu3 %v1728_v35  ;;  %v1841_v42 = vld [vmem:[%s2792_s8 + $0x38] sm:$0xff]  ;;  %v1724_v44 = vld [vmem:[%s2791_s7 + $0x50] sm:$0xff]  ;;  %v1723_v45 = vld [vmem:[%s2791_s7 + $0x48] sm:$0xff] }
 0x1a7   :  { %1581 = vmatpush.msra.mxu2 %v1084_v61  ;;  %1622 = vmatmul.f32.gmra.mxu3 %v2434_v31  ;;  %v1069_v31 = vld [vmem:[#allocation10 + $0x268] sm:$0xff]  ;;  %v1840_v61 = vld [vmem:[%s2792_s8 + $0x30] sm:$0xff] }
 0x1a8   :  { %1651 = vmatpush.msrb.mxu1 %v1225_v46  ;;  %v979_v51 = vsub.f32 %v953_v14, %v961_v27  ;;  %v1234_v27 = vld [vmem:[#allocation10 + $0x790] sm:$0xff]  ;;  %1764 = vmatpush.msrb.mxu3 %v1727_v39  ;;  %v1722_v14 = vld [vmem:[%s2791_s7 + $0x40] sm:$0xff] }
 0x1a9   :  { %1582 = vmatpush.msra.mxu2 %v1081_v48  ;;  %v1839_v46 = vld [vmem:[%s2792_s8 + $0x28] sm:$0xff]  ;;  %v1838_v48 = vld [vmem:[%s2792_s8 + $0x20] sm:$0xff] }
 0x1aa   :  { %1652 = vmatpush.msrb.mxu1 %v1222_v49  ;;  %v2463_v52 = vmax.f32 %v979_v51, 0.0  ;;  %1765 = vmatpush.msrb.mxu3 %v1726_v0  ;;  %v1721_v49 = vld [vmem:[%s2791_s7 + $0x38] sm:$0xff]  ;;  %v1720_v51 = vld [vmem:[%s2791_s7 + $0x30] sm:$0xff]  ;;  %v1851_v39 = vld [vmem:[%s2792_s8 + $0x88] sm:$0xff] }
 0x1ab   :  { %1583 = vmatpush.msra.mxu2 %v1078_v50  ;;  %1576 = vmatmul.f32.gmra.mxu1 %v2403_v47  ;;  %v1057_v47 = vld [vmem:[#allocation10 + $0x208] sm:$0xff]  ;;  %v1837_v50 = vld [vmem:[%s2792_s8 + $0x18] sm:$0xff]  ;;  %v1760_v0 = vld [vmem:[%s2791_s7 + $0x170] sm:$0xff] }
 0x1ac   :  { %1415 = vmatmul.f32.gmra.mxu2 %v2463_v52  ;;  %1653 = vmatpush.msrb.mxu1 %v1219_v54  ;;  %v1835_v54 = vld [vmem:[%s2792_s8 + $0x8] sm:$0xff] }
 0x1ad   :  { %1553 = vmatmul.f32.gmra.mxu0 %v2463_v52  ;;  %1584 = vmatpush.msra.mxu2 %v1075_v53  ;;  %v1719_v53 = vld [vmem:[%s2791_s7 + $0x28] sm:$0xff] }
 0x1ae   :  { %1654 = vmatpush.msrb.mxu1 %v1216_v55  ;;  %1766 = vmatpush.msrb.mxu3 %v1725_v41  ;;  %v1834_v55 = vld [vmem:[%s2792_s8] sm:$0xff] }
 0x1af   :  { %1585 = vmatpush.msra.mxu2 %v1072_v25  ;;  %v1718_v25 = vld [vmem:[%s2791_s7 + $0x20] sm:$0xff] }
 0x1b0   :  { %1655 = vmatpush.msrb.mxu1 %v1213_v56  ;;  %1767 = vmatpush.msrb.mxu3 %v1724_v44  ;;  %v1865_v56 = vld [vmem:[%s2792_s8 + $0xf8] sm:$0xff]  ;;  %v1850_v41 = vld [vmem:[%s2792_s8 + $0x80] sm:$0xff] }
 0x1b1   :  { %1586 = vmatpush.msra.mxu2 %v1069_v31  ;;  %v1745_v31 = vld [vmem:[%s2791_s7 + $0xf8] sm:$0xff]  ;;  %v1758_v44 = vld [vmem:[%s2791_s7 + $0x160] sm:$0xff] }
 0x1b2   :  { %1656 = vmatpush.msrb.mxu1 %v1210_v58  ;;  %1768 = vmatpush.msrb.mxu3 %v1723_v45  ;;  %v1744_v58 = vld [vmem:[%s2791_s7 + $0xf0] sm:$0xff]  ;;  %v2682_v45 = vld [vmem:[#allocation11] sm:$0x7] }
 0x1b3   :  { %1587 = vmatpush.msra.mxu2 %v1066_v57  ;;  %v1717_v57 = vld [vmem:[%s2791_s7 + $0x18] sm:$0xff]  ;;  %1785 = vmatpush.msra.mxu0 %v1745_v31 }
 0x1b4   :  { %1504 = vmatmul.f32.vlgmr.msrb.gmra.mxu2 %v2431_v9  ;;  %1657 = vmatpush.msrb.mxu1 %v1207_v59  ;;  %v1716_v59 = vld [vmem:[%s2791_s7 + $0x10] sm:$0xff] }
 0x1b5   :  { %1642 = vmatmul.f32.vlgmr.msrb.gmra.mxu0 %v2431_v9  ;;  %1588 = vmatpush.msra.mxu2 %v1063_v36  ;;  %v1048_v9 = vld [vmem:[#allocation10 + $0x1c0] sm:$0xff]  ;;  %v1864_v36 = vld [vmem:[%s2792_s8 + $0xf0] sm:$0xff] }
 0x1b6   :  { %1658 = vmatpush.msrb.mxu1 %v1204_v62  ;;  %1769 = vmatpush.msrb.mxu3 %v1722_v14  ;;  %v1863_v62 = vld [vmem:[%s2792_s8 + $0xe8] sm:$0xff]  ;;  %v1757_v14 = vld [vmem:[%s2791_s7 + $0x158] sm:$0xff] }
 0x1b7   :  { %1589 = vmatpush.msra.mxu2 %v1060_v60  ;;  %1786 = vmatpush.msra.mxu0 %v1744_v58  ;;  %v1743_v60 = vld [vmem:[%s2791_s7 + $0xe8] sm:$0xff]  ;;  %v1881_v58 = vld [vmem:[%s2792_s8 + $0x178] sm:$0xff] }
 0x1b8   :  { %1659 = vmatpush.msrb.mxu1 %v1201_v63  ;;  %1770 = vmatpush.msrb.mxu3 %v1721_v49  ;;  %v1742_v63 = vld [vmem:[%s2791_s7 + $0xe0] sm:$0xff] }
 0x1b9   :  { %1590 = vmatpush.msra.mxu2 %v1057_v47  ;;  %1787 = vmatpush.msra.mxu0 %v1743_v60  ;;  %v1715_v47 = vld [vmem:[%s2791_s7 + $0x8] sm:$0xff]  ;;  %v1753_v60 = vld [vmem:[%s2791_s7 + $0x138] sm:$0xff] }
 0x1ba   :  { %1660 = vmatpush.msrb.mxu1 %v1198_v2  ;;  %1771 = vmatpush.msrb.mxu3 %v1720_v51  ;;  %v1714_v2 = vld [vmem:[%s2791_s7] sm:$0xff]  ;;  %v1696_v51 = vperm.slane %v2682_v45, 0 }
 0x1bb   :  { %1591 = vmatpush.msra.mxu2 %v1054_v1  ;;  %v1862_v1 = vld [vmem:[%s2792_s8 + $0xe0] sm:$0xff]  ;;  %1788 = vmatpush.msra.mxu0 %v1742_v63 }
 0x1bc   :  { %1507 = vmatmul.f32.gmra.mxu2 %v2437_v43  ;;  %1661 = vmatpush.msrb.mxu1 %v1195_v4  ;;  %v1861_v4 = vld [vmem:[%s2792_s8 + $0xd8] sm:$0xff] }
 0x1bd   :  { %1645 = vmatmul.f32.gmra.mxu0 %v2437_v43  ;;  %1592 = vmatpush.msra.mxu2 %v1051_v3  ;;  %v1273_v43 = vld [vmem:[#allocation10 + $0x8c8] sm:$0xff]  ;;  %v1741_v3 = vld [vmem:[%s2791_s7 + $0xd8] sm:$0xff] }
 0x1be   :  { %1662 = vmatpush.msrb.mxu1 %v1192_v5  ;;  %1772 = vmatpush.msrb.mxu3 %v1719_v53  ;;  %v1860_v5 = vld [vmem:[%s2792_s8 + $0xd0] sm:$0xff] }
 0x1bf   :  { %1593 = vmatpush.msra.mxu2 %v1048_v9  ;;  %1789 = vmatpush.msra.mxu0 %v1741_v3  ;;  %v1740_v9 = vld [vmem:[%s2791_s7 + $0xd0] sm:$0xff] }
 0x1c0   :  { %1663 = vmatpush.msrb.mxu1 %v1189_v8  ;;  %1773 = vmatpush.msrb.mxu3 %v1718_v25  ;;  %v1752_v3 = vld [vmem:[%s2791_s7 + $0x130] sm:$0xff] }
 0x1c1   :  { %1594 = vmatpush.msra.mxu2 %v1045_v6  ;;  %v1298_v6 = vpop.f32.mrf.mxu1  ;;  %1790 = vmatpush.msra.mxu0 %v1740_v9 }
 0x1c2   :  { %1664 = vmatpush.msrb.mxu1 %v1186_v11  ;;  %1774 = vmatpush.msrb.mxu3 %v1717_v57  ;;  %v1859_v11 = vld [vmem:[%s2792_s8 + $0xc8] sm:$0xff]  ;;  %v1754_v57 = vld [vmem:[%s2791_s7 + $0x140] sm:$0xff] }
 0x1c3   :  { %1595 = vmatpush.msra.mxu2 %v1042_v10  ;;  %1665 = vmatmul.f32.vlgmr.msrb.gmra.mxu1 %v2445_v23  ;;  %v1255_v23 = vld [vmem:[#allocation10 + $0x838] sm:$0xff]  ;;  %v1739_v10 = vld [vmem:[%s2791_s7 + $0xc8] sm:$0xff] }
 0x1c4   :  { %1596 = vmatmul.f32.vlgmr.msra.gmra.mxu2 %v2411_v7  ;;  %v1249_v7 = vld [vmem:[#allocation10 + $0x808] sm:$0xff]  ;;  %1775 = vmatpush.msrb.mxu3 %v1716_v59 }
 0x1c5   :  { %1672 = vmatpush.msrb.mxu2 %v1279_v12  ;;  %1791 = vmatpush.msra.mxu0 %v1739_v10  ;;  %v1738_v12 = vld [vmem:[%s2791_s7 + $0xc0] sm:$0xff] }
 0x1c6   :  { %1776 = vmatpush.msrb.mxu3 %v1715_v47  ;;  %v1878_v10 = vld [vmem:[%s2792_s8 + $0x160] sm:$0xff] }
 0x1c7   :  { %1673 = vmatpush.msrb.mxu2 %v1276_v13  ;;  %v1858_v13 = vld [vmem:[%s2792_s8 + $0xc0] sm:$0xff]  ;;  %1792 = vmatpush.msra.mxu0 %v1738_v12 }
 0x1c8   :  { %1777 = vmatpush.msrb.mxu3 %v1714_v2 }
 0x1c9   :  { %1674 = vmatpush.msrb.mxu2 %v1273_v43  ;;  %v1737_v43 = vld [vmem:[%s2791_s7 + $0xb8] sm:$0xff] }
 0x1ca   :  { %1993 = vmatpush.msra.mxu3 %v1865_v56  ;;  %1793 = vmatpush.msra.mxu0 %v1737_v43  ;;  %v1877_v43 = vld [vmem:[%s2792_s8 + $0x158] sm:$0xff] }
 0x1cb   :  { %1675 = vmatpush.msrb.mxu2 %v1270_v15  ;;  %1668 = vmatmul.f32.gmra.mxu1 %v2449_v38  ;;  %v1237_v38 = vld [vmem:[#allocation10 + $0x7a8] sm:$0xff] }
 0x1cc   :  { %1599 = vmatmul.f32.gmra.mxu2 %v2420_v32  ;;  %v1849_v32 = vld [vmem:[%s2792_s8 + $0x78] sm:$0xff]  ;;  %1994 = vmatpush.msra.mxu3 %v1864_v36 }
 0x1cd   :  { %1676 = vmatpush.msrb.mxu2 %v1267_v17  ;;  %v1857_v17 = vld [vmem:[%s2792_s8 + $0xb8] sm:$0xff] }
 0x1ce   :  { %1995 = vmatpush.msra.mxu3 %v1863_v62 }
 0x1cf   :  { %1677 = vmatpush.msrb.mxu2 %v1264_v18  ;;  %v1736_v18 = vld [vmem:[%s2791_s7 + $0xb0] sm:$0xff] }
 0x1d0   :  { %1996 = vmatpush.msra.mxu3 %v1862_v1  ;;  %1794 = vmatpush.msra.mxu0 %v1736_v18  ;;  %v1876_v18 = vld [vmem:[%s2792_s8 + $0x150] sm:$0xff] }
 0x1d1   :  { %1678 = vmatpush.msrb.mxu2 %v1261_v19  ;;  %v1856_v19 = vld [vmem:[%s2792_s8 + $0xb0] sm:$0xff] }
 0x1d2   :  { %1997 = vmatpush.msra.mxu3 %v1861_v4 }
 0x1d3   :  { %1679 = vmatpush.msrb.mxu2 %v1258_v20  ;;  %v1321_v20 = vpop.f32.mrf.mxu2 }
 0x1d4   :  { %1998 = vmatpush.msra.mxu3 %v1860_v5  ;;  %v1322_v33 = vadd.f32 %v1321_v20, %v1298_v6 }
 0x1d5   :  { %1680 = vmatpush.msrb.mxu2 %v1255_v23  ;;  %v1301_v23 = vpop.f32.mrf.mxu1 }
 0x1d6   :  { %1999 = vmatpush.msra.mxu3 %v1859_v11 }
 0x1d7   :  { %1681 = vmatpush.msrb.mxu2 %v1252_v21  ;;  %v1735_v21 = vld [vmem:[%s2791_s7 + $0xa8] sm:$0xff] }
 0x1d8   :  { %1795 = vmatpush.msra.mxu0 %v1735_v21  ;;  %2000 = vmatpush.msra.mxu3 %v1858_v13 }
 0x1d9   :  { %1682 = vmatpush.msrb.mxu2 %v1249_v7  ;;  %v1855_v7 = vld [vmem:[%s2792_s8 + $0xa8] sm:$0xff] }
 0x1da   :  { %2001 = vmatpush.msra.mxu3 %v1857_v17 }
 0x1db   :  { %1683 = vmatpush.msrb.mxu2 %v1246_v22  ;;  %v1324_v35 = vpop.f32.mrf.mxu2 }
 0x1dc   :  { %2002 = vmatpush.msra.mxu3 %v1856_v19 }
 0x1dd   :  { %1684 = vmatpush.msrb.mxu2 %v1243_v24  ;;  %v1734_v24 = vld [vmem:[%s2791_s7 + $0xa0] sm:$0xff] }
 0x1de   :  { %1796 = vmatpush.msra.mxu0 %v1734_v24  ;;  %2003 = vmatpush.msra.mxu3 %v1855_v7 }
 0x1df   :  { %1685 = vmatpush.msrb.mxu2 %v1240_v26  ;;  %v1367_v15 = vpop.f32.mrf.mxu0  ;;  %v1854_v26 = vld [vmem:[%s2792_s8 + $0xa0] sm:$0xff] }
 0x1e0   :  { %v1344_v8 = vpop.f32.mrf.mxu3  ;;  %2004 = vmatpush.msra.mxu3 %v1854_v26 }
 0x1e1   :  { %1686 = vmatpush.msrb.mxu2 %v1237_v38  ;;  %v1733_v38 = vld [vmem:[%s2791_s7 + $0x98] sm:$0xff] }
 0x1e2   :  { %1797 = vmatpush.msra.mxu0 %v1733_v38  ;;  %v1697_v38 = vperm.slane %v2682_v45, 1 }
 0x1e3   :  { %1687 = vmatpush.msrb.mxu2 %v1234_v27  ;;  %v1853_v27 = vld [vmem:[%s2792_s8 + $0x98] sm:$0xff] }
 0x1e4   :  { %1688 = vmatmul.f32.vlgmr.msrb.gmra.mxu2 %v2457_v16  ;;  %v1843_v16 = vld [vmem:[%s2792_s8 + $0x48] sm:$0xff]  ;;  %2005 = vmatpush.msra.mxu3 %v1853_v27 }
 0x1e5   :  { %1886 = vmatpush.msra.mxu2 %v1849_v32 }
 0x1e7   :  { %1887 = vmatpush.msra.mxu2 %v1848_v28 }
 0x1e9   :  { %1888 = vmatpush.msra.mxu2 %v1847_v29  ;;  %v1370_v32 = vpop.f32.mrf.mxu0  ;;  %v1732_v29 = vld [vmem:[%s2791_s7 + $0x90] sm:$0xff] }
 0x1ea   :  { %1798 = vmatpush.msra.mxu0 %v1732_v29 }
 0x1eb   :  { %1889 = vmatpush.msra.mxu2 %v1846_v30  ;;  %v1347_v22 = vpop.f32.mrf.mxu3  ;;  %v1852_v30 = vld [vmem:[%s2792_s8 + $0x90] sm:$0xff] }
 0x1ec   :  { %1691 = vmatmul.f32.gmra.mxu2 %v2463_v52  ;;  %v1836_v52 = vld [vmem:[%s2792_s8 + $0x10] sm:$0xff]  ;;  %2006 = vmatpush.msra.mxu3 %v1852_v30 }
 0x1ed   :  { %1890 = vmatpush.msra.mxu2 %v1845_v34  ;;  %v1761_v34 = vld [vmem:[%s2791_s7 + $0x178] sm:$0xff] }
 0x1ee   :  { %1808 = vmatpush.msra.mxu1 %v1761_v34  ;;  %2007 = vmatpush.msra.mxu3 %v1851_v39 }
 0x1ef   :  { %1891 = vmatpush.msra.mxu2 %v1844_v37  ;;  %v1731_v37 = vld [vmem:[%s2791_s7 + $0x88] sm:$0xff] }
 0x1f0   :  { %1799 = vmatpush.msra.mxu0 %v1731_v37  ;;  %1809 = vmatpush.msra.mxu1 %v1760_v0  ;;  %v1872_v37 = vld [vmem:[%s2792_s8 + $0x130] sm:$0xff] }
 0x1f1   :  { %1892 = vmatpush.msra.mxu2 %v1843_v16  ;;  %v1345_v16 = vadd.f32 %v1344_v8, %v1322_v33  ;;  %v1459_v49 = vpop.f32.mrf.mxu0  ;;  %2008 = vmatpush.msra.mxu3 %v1850_v41  ;;  %v1751_v8 = vld [vmem:[%s2791_s7 + $0x128] sm:$0xff]  ;;  %v1873_v33 = vld [vmem:[%s2792_s8 + $0x138] sm:$0xff] }
 0x1f3   :  { %1893 = vmatpush.msra.mxu2 %v1842_v40  ;;  %v1730_v40 = vld [vmem:[%s2791_s7 + $0x80] sm:$0xff] }
 0x1f4   :  { %1800 = vmatpush.msra.mxu0 %v1730_v40  ;;  %v1871_v40 = vld [vmem:[%s2792_s8 + $0x128] sm:$0xff] }
 0x1f5   :  { %1894 = vmatpush.msra.mxu2 %v1841_v42  ;;  %v1759_v42 = vld [vmem:[%s2791_s7 + $0x168] sm:$0xff] }
 0x1f6   :  { %1810 = vmatpush.msra.mxu1 %v1759_v42  ;;  %1932 = vmatpush.msrb.mxu0 %v1881_v58 }
 0x1f7   :  { %1895 = vmatpush.msra.mxu2 %v1840_v61  ;;  %v1436_v61 = vpop.f32.mrf.mxu3 }
 0x1f8   :  { %1811 = vmatpush.msra.mxu1 %v1758_v44  ;;  %v1460_v12 = vadd.f32 %v1459_v49, %v1436_v61  ;;  %v1870_v44 = vld [vmem:[%s2792_s8 + $0x120] sm:$0xff]  ;;  %v1868_v49 = vld [vmem:[%s2792_s8 + $0x110] sm:$0xff] }
 0x1f9   :  { %1896 = vmatpush.msra.mxu2 %v1839_v46  ;;  %v1368_v46 = vadd.f32 %v1367_v15, %v1345_v16  ;;  %v1749_v15 = vld [vmem:[%s2791_s7 + $0x118] sm:$0xff] }
 0x1fa   :  { %1812 = vmatpush.msra.mxu1 %v1757_v14  ;;  %v1869_v14 = vld [vmem:[%s2792_s8 + $0x118] sm:$0xff] }
 0x1fb   :  { %1897 = vmatpush.msra.mxu2 %v1838_v48  ;;  %v1325_v48 = vadd.f32 %v1324_v35, %v1301_v23 }
 0x1fd   :  { %1898 = vmatpush.msra.mxu2 %v1837_v50 }
 0x1ff   :  { %1899 = vmatpush.msra.mxu2 %v1836_v52  ;;  %v1390_v28 = vpop.f32.mrf.mxu1 }
 0x200   :  { %v1391_v50 = vadd.f32 %v1390_v28, %v1368_v46 }
 0x201   :  { %1900 = vmatpush.msra.mxu2 %v1835_v54  ;;  %v1348_v54 = vadd.f32 %v1347_v22, %v1325_v48  ;;  %v1747_v22 = vld [vmem:[%s2791_s7 + $0x108] sm:$0xff] }
 0x203   :  { %1901 = vmatpush.msra.mxu2 %v1834_v55  ;;  %v1756_v55 = vld [vmem:[%s2791_s7 + $0x150] sm:$0xff] }
 0x204   :  { %1813 = vmatpush.msra.mxu1 %v1756_v55 }
 0x205   :  { %1909 = vmatpush.msrb.mxu2 %v1865_v56  ;;  %v1755_v56 = vld [vmem:[%s2791_s7 + $0x148] sm:$0xff] }
 0x206   :  { %1814 = vmatpush.msra.mxu1 %v1755_v56 }
 0x207   :  { %1910 = vmatpush.msrb.mxu2 %v1864_v36  ;;  %v1371_v36 = vadd.f32 %v1370_v32, %v1348_v54  ;;  %v1746_v32 = vld [vmem:[%s2791_s7 + $0x100] sm:$0xff] }
 0x208   :  { %v1393_v52 = vpop.f32.mrf.mxu1  ;;  %1815 = vmatpush.msra.mxu1 %v1754_v57 }
 0x209   :  { %1911 = vmatpush.msrb.mxu2 %v1863_v62  ;;  %v1439_v62 = vpop.f32.mrf.mxu3  ;;  %v1394_v47 = vadd.f32 %v1393_v52, %v1371_v36  ;;  %v1866_v52 = vld [vmem:[%s2792_s8 + $0x100] sm:$0xff] }
 0x20a   :  { %1816 = vmatpush.msra.mxu1 %v1753_v60 }
 0x20b   :  { %1912 = vmatpush.msrb.mxu2 %v1862_v1  ;;  %v1880_v1 = vld [vmem:[%s2792_s8 + $0x170] sm:$0xff] }
 0x20c   :  { %1933 = vmatpush.msrb.mxu0 %v1880_v1  ;;  %1817 = vmatpush.msra.mxu1 %v1752_v3 }
 0x20d   :  { %1913 = vmatpush.msrb.mxu2 %v1861_v4  ;;  %v1462_v4 = vpop.f32.mrf.mxu0 }
 0x20e   :  { %1818 = vmatpush.msra.mxu1 %v1751_v8  ;;  %v1463_v29 = vadd.f32 %v1462_v4, %v1439_v62 }
 0x20f   :  { %1914 = vmatpush.msrb.mxu2 %v1860_v5  ;;  %v1879_v5 = vld [vmem:[%s2792_s8 + $0x168] sm:$0xff] }
 0x210   :  { %v1482_v9 = vpop.f32.mrf.mxu1  ;;  %1934 = vmatpush.msrb.mxu0 %v1879_v5 }
 0x211   :  { %1915 = vmatpush.msrb.mxu2 %v1859_v11  ;;  %v1750_v11 = vld [vmem:[%s2791_s7 + $0x120] sm:$0xff]  ;;  %v1528_v20 = vpop.f32.mrf.mxu3 }
 0x212   :  { %1935 = vmatpush.msrb.mxu0 %v1878_v10  ;;  %1819 = vmatpush.msra.mxu1 %v1750_v11 }
 0x213   :  { %1916 = vmatpush.msrb.mxu2 %v1858_v13 }
 0x214   :  { %1936 = vmatpush.msrb.mxu0 %v1877_v43  ;;  %1820 = vmatpush.msra.mxu1 %v1749_v15 }
 0x215   :  { %1917 = vmatpush.msrb.mxu2 %v1857_v17  ;;  %v1483_v17 = vadd.f32 %v1482_v9, %v1460_v12 }
 0x216   :  { %1937 = vmatpush.msrb.mxu0 %v1876_v18 }
 0x217   :  { %1918 = vmatpush.msrb.mxu2 %v1856_v19  ;;  %v1748_v19 = vld [vmem:[%s2791_s7 + $0x110] sm:$0xff] }
 0x218   :  { %1821 = vmatpush.msra.mxu1 %v1748_v19  ;;  %v1485_v28 = vpop.f32.mrf.mxu1  ;;  %v2039_v19 = vld [vmem:[#allocation13] ss:$0 sm:$0xff] }
 0x219   :  { %1919 = vmatpush.msrb.mxu2 %v1855_v7  ;;  %v1875_v7 = vld [vmem:[%s2792_s8 + $0x148] sm:$0xff]  ;;  %v1486_v34 = vadd.f32 %v1485_v28, %v1463_v29 }
 0x21a   :  { %1938 = vmatpush.msrb.mxu0 %v1875_v7  ;;  %1822 = vmatpush.msra.mxu1 %v1747_v22 }
 0x21b   :  { %1920 = vmatpush.msrb.mxu2 %v1854_v26 }
 0x21c   :  { %1823 = vmatpush.msra.mxu1 %v1746_v32 }
 0x21d   :  { %1921 = vmatpush.msrb.mxu2 %v1853_v27  ;;  %v1874_v27 = vld [vmem:[%s2792_s8 + $0x140] sm:$0xff] }
 0x21e   :  { %1939 = vmatpush.msrb.mxu0 %v1874_v27  ;;  %2009 = vmatpush.msrb.mxu1 %v1881_v58 }
 0x21f   :  { %1922 = vmatpush.msrb.mxu2 %v1852_v30 }
 0x220   :  { %1940 = vmatpush.msrb.mxu0 %v1873_v33  ;;  %2010 = vmatpush.msrb.mxu1 %v1880_v1  ;;  %v1698_v1 = vperm.slane %v2682_v45, 2 }
 0x221   :  { %1923 = vmatpush.msrb.mxu2 %v1851_v39 }
 0x222   :  { %v1551_v24 = vpop.f32.mrf.mxu0  ;;  %1941 = vmatpush.msrb.mxu0 %v1872_v37  ;;  %2011 = vmatpush.msrb.mxu1 %v1879_v5 }
 0x223   :  { %1924 = vmatpush.msrb.mxu2 %v1850_v41  ;;  %v1531_v41 = vpop.f32.mrf.mxu3 }
 0x224   :  { %1942 = vmatpush.msrb.mxu0 %v1871_v40  ;;  %2012 = vmatpush.msrb.mxu1 %v1878_v10 }
 0x226   :  { %1943 = vmatpush.msrb.mxu0 %v1870_v44  ;;  %2013 = vmatpush.msrb.mxu1 %v1877_v43 }
 0x227   :  { %v1413_v53 = vpop.f32.mrf.mxu2 }
 0x228   :  { %v1414_v25 = vadd.f32 %v1413_v53, %v1391_v50  ;;  %1944 = vmatpush.msrb.mxu0 %v1869_v14  ;;  %2014 = vmatpush.msrb.mxu1 %v1876_v18  ;;  %v1574_v53 = vpop.f32.mrf.mxu1 }
 0x22a   :  { %v1702_v31 = vsub.f32 %v1414_v25, %v1696_v51  ;;  %v1554_v61 = vpop.f32.mrf.mxu0  ;;  %1945 = vmatpush.msrb.mxu0 %v1868_v49  ;;  %2015 = vmatpush.msrb.mxu1 %v1875_v7 }
 0x22b   :  { %v1620_v55 = vpop.f32.mrf.mxu3 }
 0x22c   :  { %v1708_v59 = vmax.f32 %v1702_v31, 0.0  ;;  %2016 = vmatpush.msrb.mxu1 %v1874_v27 }
 0x22e   :  { %1778 = vmatmul.f32.vlgmr.msrb.gmra.mxu3 %v1708_v59  ;;  %1902 = vmatmul.f32.vlgmr.msra.gmra.mxu2 %v1708_v59 }
 0x22f   :  { %v1416_v63 = vpop.f32.mrf.mxu2  ;;  %2017 = vmatpush.msrb.mxu1 %v1873_v33 }
 0x230   :  { %v1417_v2 = vadd.f32 %v1416_v63, %v1394_v47  ;;  %v1577_v31 = vpop.f32.mrf.mxu1 }
 0x231   :  { %2018 = vmatpush.msrb.mxu1 %v1872_v37 }
 0x232   :  { %v1705_v6 = vsub.f32 %v1417_v2, %v1696_v51  ;;  %v1867_v51 = vld [vmem:[%s2792_s8 + $0x108] sm:$0xff]  ;;  %v1643_v57 = vpop.f32.mrf.mxu0 }
 0x233   :  { %1946 = vmatpush.msrb.mxu0 %v1867_v51  ;;  %2019 = vmatpush.msrb.mxu1 %v1871_v40  ;;  %v1623_v62 = vpop.f32.mrf.mxu3 }
 0x234   :  { %v1711_v13 = vmax.f32 %v1705_v6, 0.0 }
 0x235   :  { %1947 = vmatpush.msrb.mxu0 %v1866_v52  ;;  %2020 = vmatpush.msrb.mxu1 %v1870_v44 }
 0x236   :  { %1781 = vmatmul.f32.gmra.mxu3 %v1711_v13  ;;  %1905 = vmatmul.f32.gmra.mxu2 %v1711_v13 }
 0x237   :  { %v1505_v23 = vpop.f32.mrf.mxu2  ;;  %2021 = vmatpush.msrb.mxu1 %v1869_v14 }
 0x238   :  { %v1506_v21 = vadd.f32 %v1505_v23, %v1483_v17 }
 0x239   :  { %2022 = vmatpush.msrb.mxu1 %v1868_v49 }
 0x23a   :  { %v1529_v26 = vadd.f32 %v1528_v20, %v1506_v21  ;;  %v1646_v4 = vpop.f32.mrf.mxu0 }
 0x23b   :  { %2023 = vmatpush.msrb.mxu1 %v1867_v51 }
 0x23c   :  { %v1552_v30 = vadd.f32 %v1551_v24, %v1529_v26 }
 0x23d   :  { %2024 = vmatpush.msrb.mxu1 %v1866_v52 }
 0x23e   :  { %v1703_v35 = vsub.f32 %v1552_v30, %v1697_v38 }
 0x23f   :  { %v1508_v39 = vpop.f32.mrf.mxu2 }
 0x240   :  { %v1709_v16 = vmax.f32 %v1703_v35, 0.0  ;;  %v1509_v0 = vadd.f32 %v1508_v39, %v1486_v34  ;;  %v1666_v60 = vpop.f32.mrf.mxu1 }
 0x242   :  { %v1532_v42 = vadd.f32 %v1531_v41, %v1509_v0  ;;  %1801 = vmatmul.f32.vlgmr.msra.gmra.mxu0 %v1709_v16  ;;  %1925 = vmatmul.f32.vlgmr.msrb.gmra.mxu2 %v1709_v16 }
 0x244   :  { %v1555_v46 = vadd.f32 %v1554_v61, %v1532_v42 }
 0x246   :  { %v1706_v48 = vsub.f32 %v1555_v46, %v1697_v38 }
 0x247   :  { %v1597_v54 = vpop.f32.mrf.mxu2 }
 0x248   :  { %v1712_v50 = vmax.f32 %v1706_v48, 0.0  ;;  %v1598_v25 = vadd.f32 %v1597_v54, %v1574_v53  ;;  %v1669_v8 = vpop.f32.mrf.mxu1 }
 0x24a   :  { %1804 = vmatmul.f32.gmra.mxu0 %v1712_v50  ;;  %1928 = vmatmul.f32.vlgmr.msra.gmra.mxu3 %v1712_v50  ;;  %v1621_v56 = vadd.f32 %v1620_v55, %v1598_v25 }
 0x24c   :  { %v1644_v59 = vadd.f32 %v1643_v57, %v1621_v56 }
 0x24e   :  { %v1667_v63 = vadd.f32 %v1666_v60, %v1644_v59 }
 0x24f   :  { %v1600_v58 = vpop.f32.mrf.mxu2 }
 0x250   :  { %v1601_v36 = vadd.f32 %v1600_v58, %v1577_v31 }
 0x252   :  { %v1624_v47 = vadd.f32 %v1623_v62, %v1601_v36 }
 0x254   :  { %v1647_v5 = vadd.f32 %v1646_v4, %v1624_v47 }
 0x256   :  { %v1670_v10 = vadd.f32 %v1669_v8, %v1647_v5 }
 0x267   :  { %v1689_v2 = vpop.f32.mrf.mxu2 }
 0x268   :  { %v1690_v3 = vadd.f32 %v1689_v2, %v1667_v63 }
 0x26a   :  { %v1704_v9 = vsub.f32 %v1690_v3, %v1698_v1 }
 0x26c   :  { %v1710_v6 = vmax.f32 %v1704_v9, 0.0 }
 0x26e   :  { %1824 = vmatmul.f32.vlgmr.msra.gmra.mxu1 %v1710_v6  ;;  %1948 = vmatmul.f32.vlgmr.msrb.gmra.mxu0 %v1710_v6 }
 0x26f   :  { %v1692_v11 = vpop.f32.mrf.mxu2 }
 0x270   :  { %v1693_v12 = vadd.f32 %v1692_v11, %v1670_v10 }
 0x272   :  { %v1707_v13 = vsub.f32 %v1693_v12, %v1698_v1 }
 0x274   :  { %v1713_v43 = vmax.f32 %v1707_v13, 0.0 }
 0x276   :  { %1827 = vmatmul.f32.gmra.mxu1 %v1713_v43 }
 0x27e   :  { %1951 = vmatmul.f32.vlgmr.msrb.gmra.mxu1 %v1713_v43 }
 0x2b1   :  { %v1903_v15 = vpop.f32.mrf.mxu2  ;;  %v1779_v20 = vpop.f32.mrf.mxu3 }
 0x2b2   :  { %v1904_v21 = vadd.f32 %v2039_v19, %v1903_v15 }
 0x2b9   :  { %v1906_v18 = vpop.f32.mrf.mxu2  ;;  %v1782_v32 = vpop.f32.mrf.mxu3 }
 0x2ba   :  { %v1907_v34 = vadd.f32 %v2039_v19, %v1906_v18 }
 0x2bf   :  { %v1802_v17 = vpop.f32.mrf.mxu0 }
 0x2c0   :  { %v1803_v7 = vadd.f32 %v1802_v17, %v1779_v20 }
 0x2c5   :  { %v1926_v23 = vpop.f32.mrf.mxu2 }
 0x2c6   :  { %v1927_v22 = vadd.f32 %v1926_v23, %v1904_v21 }
 0x2c7   :  { %v1805_v45 = vpop.f32.mrf.mxu0 }
 0x2c8   :  { %v1806_v28 = vadd.f32 %v1805_v45, %v1782_v32 }
 0x2cd   :  { %v1929_v33 = vpop.f32.mrf.mxu3 }
 0x2ce   :  { %v1930_v35 = vadd.f32 %v1929_v33, %v1907_v34 }
 0x2eb   :  { %v1825_v24 = vpop.f32.mrf.mxu1  ;;  %v1949_v26 = vpop.f32.mrf.mxu0 }
 0x2ec   :  { %v1826_v38 = vadd.f32 %v1825_v24, %v1803_v7  ;;  %v1950_v27 = vadd.f32 %v1949_v26, %v1927_v22 }
 0x2ee   :  { %1832 = vst.msk [vmem:[#allocation14] sm:$0xff] %vm1831_vm2, %v1826_v38 }
 0x2ef   :  { %1956 = vst.msk [vmem:[%s2795_s11] sm:$0xff] %vm1955_vm3, %v1950_v27 }
 0x2f3   :  { %v1828_v29 = vpop.f32.mrf.mxu1 }
 0x2f4   :  { %v1829_v30 = vadd.f32 %v1828_v29, %v1806_v28 }
 0x2f6   :  { %1833 = vst.msk [vmem:[#allocation14 + $0x8] sm:$0xff] %vm1831_vm2, %v1829_v30 }
 0x2f7   :  { %1970 = dma.vmem_to_hbm [thread:$0]  %s1963_s16, 256, %s1965_s6, [#allocation4], %s2254_s19, %s2254_s19, %s2255_s20  }
 0x2fb   :  { %v1952_v37 = vpop.f32.mrf.mxu1 }
 0x2fc   :  { %v1953_v39 = vadd.f32 %v1952_v37, %v1930_v35 }
 0x2fe   :  { %1957 = vst.msk [vmem:[%s2795_s11 + $0x8] sm:$0xff] %vm1955_vm3, %v1953_v39 }
 0x2ff   :  { %2240 = dma.done.wait [#allocation4], 256  }
 0x300   :  { %2241 = vsyncadd [#allocation4], 4294967040 }
 0x301   :  { %1979 = vsyncpa [#allocation3], 1 }
 0x302   :  { %1980 = vsyncpa [#allocation6], 1 }
 0x303   :  { %1981 = vsyncpa [#allocation9], 1 }
 0x304   :  { %1982 = vsyncpa [#allocation12], 1 }
 0x305   :  { %1983 = vsyncpa [#allocation4], 1 }

</bundles_post_ra>
